<compile_context>
chip_gen: v5e
topology: v5e:2x2
jax: 0.10.0
libtpu: 0.0.40
codegen_flags: <defaults>
</compile_context>

<pallas_src>
import functools

import jax
import jax.numpy as jnp
import numpy as np
from jax.experimental import pallas as pl
from jax.experimental.pallas import tpu as pltpu

EPS = 1e-4
HP = 128  # lane-aligned padded hidden size (H=32 -> 128)


def _gcn_kernel(x0_ref, adj_ref, wb_ref, out_ref, *, layer_nums, nt):
    """Single-invocation GCN over the stacked [slot ; dialogue] node state.

    x0_ref : (NT, HP)        stacked initial node state (lanes >= H are zero)
    adj_ref: (4*NT, NT)      per-relation full-graph adjacency (normalized,
                             block-diagonal over batch), stacked on sublanes
    wb_ref : (HP+8, 7*HP)    rows [0:HP)  = [Ws|Wr0|Wr1|Wr2|Wr3|Wg_prev|Wg_cur]
                             row   HP     = matching biases (Wg_prev block = 0)
    out_ref: (NT, HP)
    """
    NT = nt
    # Hoist all layer-invariant operands once (outside the layer loop).
    w_cat = wb_ref[:HP, :6 * HP]            # (HP, 6HP) fused projection weights
    wg1 = wb_ref[:HP, 6 * HP:7 * HP]        # (HP, HP)  gate weight, "current" half
    b_cat = wb_ref[HP:HP + 1, :6 * HP]      # (1, 6HP)
    bg = wb_ref[HP:HP + 1, 6 * HP:7 * HP]   # (1, HP)
    adj = [adj_ref[k * NT:(k + 1) * NT, :] for k in range(4)]  # 4 x (NT, NT)

    x = x0_ref[...]                         # (NT, HP)
    for _ in range(layer_nums):
        # One fused, lane-dense projection matmul for every linear layer.
        # Column blocks: [f_s(x) | f_r0(x) | f_r1(x) | f_r2(x) | f_r3(x) | x@Wg_prev]
        p = jnp.dot(x, w_cat, preferred_element_type=jnp.float32) + b_cat

        # Relational message aggregation: 4 accumulating dots against full
        # stacked-graph adjacencies (slot+dialogue targets handled at once).
        agg = jnp.dot(adj[0], p[:, 1 * HP:2 * HP], preferred_element_type=jnp.float32)
        agg = agg + jnp.dot(adj[1], p[:, 2 * HP:3 * HP], preferred_element_type=jnp.float32)
        agg = agg + jnp.dot(adj[2], p[:, 3 * HP:4 * HP], preferred_element_type=jnp.float32)
        agg = agg + jnp.dot(adj[3], p[:, 4 * HP:5 * HP], preferred_element_type=jnp.float32)
        cur = p[:, 0:HP] + agg

        # gate = sigmoid(f_g(concat([cur, prev], -1))) = sigmoid(cur@Wg1 + prev@Wg2 + b)
        gate = jax.nn.sigmoid(
            jnp.dot(cur, wg1, preferred_element_type=jnp.float32)
            + p[:, 5 * HP:6 * HP] + bg)
        x = jnp.maximum(cur, 0.0) * gate + x * (1.0 - gate)

    out_ref[...] = x


def _block_diag(a):
    """(B, m, n) batched matrix -> (B*m, B*n) block-diagonal matrix."""
    b, m, n = a.shape
    eye = jnp.eye(b, dtype=a.dtype)
    return (eye[:, None, :, None] * a[:, :, None, :]).reshape(b * m, b * n)


@functools.partial(jax.jit, static_argnames=("layer_nums",))
def multi_relational_gcn(params, slot_node, dialogue_node, update_current_mm,
                         slot_all_connect, update_mm, slot_domain_connect,
                         *, layer_nums):
    B, S, H = slot_node.shape
    D = dialogue_node.shape[0]          # module implies D == B
    assert D == B
    NS, ND = B * S, B * D
    NT = NS + ND
    f32 = jnp.float32

    def norm(a):
        return a / (jnp.sum(a, axis=-1, keepdims=True) + EPS)

    # Pre-normalize adjacencies once (layer-invariant), block-diagonalize over
    # the batch and assemble one full stacked-graph adjacency per relation.
    ucm_n = _block_diag(norm(update_current_mm))                        # (NS, ND)
    sac_n = _block_diag(norm(slot_all_connect))                         # (NS, NS)
    umm_n = _block_diag(norm(update_mm))                                # (NS, ND)
    sdc_n = _block_diag(norm(slot_domain_connect))                      # (NS, NS)
    ucm_t_n = _block_diag(norm(jnp.swapaxes(update_current_mm, 1, 2)))  # (ND, NS)
    umm_t_n = _block_diag(norm(jnp.swapaxes(update_mm, 1, 2)))          # (ND, NS)

    zS = jnp.zeros((NS, NS), f32)
    zSD = jnp.zeros((NS, ND), f32)
    zDS = jnp.zeros((ND, NS), f32)
    zD = jnp.zeros((ND, ND), f32)
    A0 = jnp.block([[zS, ucm_n], [ucm_t_n, zD]])   # relation 0: update_current_mm
    A1 = jnp.block([[sac_n, zSD], [zDS, zD]])      # relation 1: slot_all_connect
    A2 = jnp.block([[zS, umm_n], [umm_t_n, zD]])   # relation 2: update_mm
    A3 = jnp.block([[sdc_n, zSD], [zDS, zD]])      # relation 3: slot_domain_connect
    adj = jnp.concatenate([A0, A1, A2, A3], axis=0)        # (4*NT, NT)
    # TODO(synk): for large B, replace the O(B^2) block-diagonal adjacency with
    # per-batch tiling (and a 2-wide parallel grid on v7x) to keep VMEM flat.

    # Fuse all linear weights/biases into a single lane-aligned slab.
    # torch Linear stores (out,in) -> transpose to (in,out); pad H -> HP lanes.
    def padw(w):  # (H, H) -> (HP, HP)
        return jnp.zeros((HP, HP), f32).at[:H, :H].set(w)

    def padb(b):  # (H,) -> (HP,)
        return jnp.zeros((HP,), f32).at[:H].set(b)

    fg_wt = params["fg_w"].T                       # (2H, H): [Wg_cur ; Wg_prev]
    w_blocks = [params["fs_w"].T,
                params["fr_w"][0].T, params["fr_w"][1].T,
                params["fr_w"][2].T, params["fr_w"][3].T,
                fg_wt[H:],                          # gate "previous" half
                fg_wt[:H]]                          # gate "current" half
    b_blocks = [params["fs_b"],
                params["fr_b"][0], params["fr_b"][1],
                params["fr_b"][2], params["fr_b"][3],
                jnp.zeros((H,), f32),               # no bias on the g_prev block
                params["fg_b"]]
    w_row = jnp.concatenate([padw(w) for w in w_blocks], axis=1)   # (HP, 7HP)
    b_row = jnp.concatenate([padb(b) for b in b_blocks], axis=0)   # (7HP,)
    wb = (jnp.zeros((HP + 8, 7 * HP), f32)
          .at[:HP, :].set(w_row)
          .at[HP, :].set(b_row))

    # Activation slab: stacked [slot nodes of all batches ; dialogue nodes
    # replicated per batch], zero-padded to HP lanes.
    x0 = (jnp.zeros((NT, HP), f32)
          .at[:NS, :H].set(slot_node.reshape(NS, H))
          .at[NS:, :H].set(jnp.tile(dialogue_node, (B, 1))))

    kernel = functools.partial(_gcn_kernel, layer_nums=layer_nums, nt=NT)
    vmem = pl.BlockSpec(memory_space=pltpu.MemorySpace.VMEM)
    # Gridless call: whole problem (<1 MiB) lives in VMEM, nothing to pipeline.
    out = pl.pallas_call(
        kernel,
        out_shape=jax.ShapeDtypeStruct((NT, HP), jnp.float32),
        in_specs=[vmem, vmem, vmem],
        out_specs=pl.BlockSpec(memory_space=pltpu.MemorySpace.VMEM),
    )(x0, adj, wb)

    slot_out = out[:NS, :H].reshape(B, S, H)
    dial_out = out[NS:, :H].reshape(B, D, H)
    return slot_out, dial_out


def reference(params, slot, dial, ucm, sac, umm, sdc, *, layer_nums):
    """Pure-JAX transcription of the PyTorch forward (for correctness check)."""
    def lin(x, w, b):
        return x @ w.T + b

    D = dial.shape[0]
    dial = jnp.broadcast_to(dial[None], (D, D, dial.shape[1]))
    ucm_t = jnp.swapaxes(ucm, 1, 2)
    umm_t = jnp.swapaxes(umm, 1, 2)
    for _ in range(layer_nums):
        slot_cur = lin(slot, params["fs_w"], params["fs_b"])
        dial_cur = lin(dial, params["fs_w"], params["fs_b"])
        rd = [lin(dial, params["fr_w"][r], params["fr_b"][r]) for r in range(4)]
        rs = [lin(slot, params["fr_w"][r], params["fr_b"][r]) for r in range(4)]
        d2s = ucm @ rd[0] / (ucm.sum(-1, keepdims=True) + EPS)
        s2d = ucm_t @ rs[0] / (ucm_t.sum(-1, keepdims=True) + EPS)
        sac_s2s = sac @ rs[1] / (sac.sum(-1, keepdims=True) + EPS)
        umm_d2s = umm @ rd[2] / (umm.sum(-1, keepdims=True) + EPS)
        umm_s2d = umm_t @ rs[2] / (umm_t.sum(-1, keepdims=True) + EPS)
        sdc_s2s = sdc @ rs[3] / (sdc.sum(-1, keepdims=True) + EPS)
        dial_cur = dial_cur + s2d + umm_s2d
        slot_cur = slot_cur + d2s + sac_s2s + umm_d2s + sdc_s2s
        sg = jax.nn.sigmoid(lin(jnp.concatenate([slot_cur, slot], -1),
                                params["fg_w"], params["fg_b"]))
        slot = jax.nn.relu(slot_cur) * sg + slot * (1 - sg)
        dg = jax.nn.sigmoid(lin(jnp.concatenate([dial_cur, dial], -1),
                                params["fg_w"], params["fg_b"]))
        dial = jax.nn.relu(dial_cur) * dg + dial * (1 - dg)
    return slot, dial


if __name__ == "__main__":
    H = 32           # hidden_size
    LAYERS = 2       # layer_nums
    R = 4            # relation_type (forward consumes relations 0..3)
    B = 4            # batch == number of dialogue nodes (module implies this)
    S = 8            # number of slot nodes

    key = jax.random.PRNGKey(0)
    ks = jax.random.split(key, 12)

    params = {
        "fr_w": 0.1 * jax.random.normal(ks[0], (R, H, H), jnp.float32),
        "fr_b": 0.1 * jax.random.normal(ks[1], (R, H), jnp.float32),
        "fs_w": 0.1 * jax.random.normal(ks[2], (H, H), jnp.float32),
        "fs_b": 0.1 * jax.random.normal(ks[3], (H,), jnp.float32),
        "fg_w": 0.1 * jax.random.normal(ks[4], (H, 2 * H), jnp.float32),
        "fg_b": 0.1 * jax.random.normal(ks[5], (H,), jnp.float32),
    }

    slot_node = jax.random.normal(ks[6], (B, S, H), jnp.float32)
    dialogue_node = jax.random.normal(ks[7], (B, H), jnp.float32)
    update_current_mm = (jax.random.uniform(ks[8], (B, S, B)) < 0.5).astype(jnp.float32)
    slot_all_connect = (jax.random.uniform(ks[9], (B, S, S)) < 0.5).astype(jnp.float32)
    update_mm = (jax.random.uniform(ks[10], (B, S, B)) < 0.5).astype(jnp.float32)
    slot_domain_connect = (jax.random.uniform(ks[11], (B, S, S)) < 0.5).astype(jnp.float32)

    slot_out, dial_out = multi_relational_gcn(
        params, slot_node, dialogue_node, update_current_mm, slot_all_connect,
        update_mm, slot_domain_connect, layer_nums=LAYERS)
    jax.block_until_ready((slot_out, dial_out))

    slot_ref, dial_ref = reference(
        params, slot_node, dialogue_node, update_current_mm, slot_all_connect,
        update_mm, slot_domain_connect, layer_nums=LAYERS)

    np.testing.assert_allclose(np.asarray(slot_out), np.asarray(slot_ref),
                               rtol=1e-4, atol=1e-4)
    np.testing.assert_allclose(np.asarray(dial_out), np.asarray(dial_ref),
                               rtol=1e-4, atol=1e-4)
    print("KERNEL_OK")
</pallas_src>

<mosaic_0001>
module attributes {stable_mosaic.version = 11 : i64} {
  func.func @_gcn_kernel(%arg0: memref<48x128xf32, #tpu.memory_space<vmem>>, %arg1: memref<192x48xf32, #tpu.memory_space<vmem>>, %arg2: memref<136x896xf32, #tpu.memory_space<vmem>>, %arg3: memref<48x128xf32, #tpu.memory_space<vmem>>) attributes {dimension_semantics = [], scalar_prefetch = 0 : i64, scratch_operands = 0 : i64, tpu.core_type = #tpu.core_type<tc>} {
    %c0 = arith.constant 0 : index
    %c0_0 = arith.constant 0 : index
    %0 = vector.load %arg2[%c0, %c0_0] : memref<136x896xf32, #tpu.memory_space<vmem>>, vector<128x768xf32>
    %c0_1 = arith.constant 0 : index
    %c768 = arith.constant 768 : index
    %1 = vector.load %arg2[%c0_1, %c768] : memref<136x896xf32, #tpu.memory_space<vmem>>, vector<128x128xf32>
    %c128 = arith.constant 128 : index
    %c0_2 = arith.constant 0 : index
    %2 = vector.load %arg2[%c128, %c0_2] : memref<136x896xf32, #tpu.memory_space<vmem>>, vector<1x768xf32>
    %c128_3 = arith.constant 128 : index
    %c768_4 = arith.constant 768 : index
    %3 = vector.load %arg2[%c128_3, %c768_4] : memref<136x896xf32, #tpu.memory_space<vmem>>, vector<1x128xf32>
    %c0_5 = arith.constant 0 : index
    %c0_6 = arith.constant 0 : index
    %4 = vector.load %arg1[%c0_5, %c0_6] : memref<192x48xf32, #tpu.memory_space<vmem>>, vector<48x48xf32>
    %c48 = arith.constant 48 : index
    %c0_7 = arith.constant 0 : index
    %5 = vector.load %arg1[%c48, %c0_7] : memref<192x48xf32, #tpu.memory_space<vmem>>, vector<48x48xf32>
    %c96 = arith.constant 96 : index
    %c0_8 = arith.constant 0 : index
    %6 = vector.load %arg1[%c96, %c0_8] : memref<192x48xf32, #tpu.memory_space<vmem>>, vector<48x48xf32>
    %c144 = arith.constant 144 : index
    %c0_9 = arith.constant 0 : index
    %7 = vector.load %arg1[%c144, %c0_9] : memref<192x48xf32, #tpu.memory_space<vmem>>, vector<48x48xf32>
    %c0_10 = arith.constant 0 : index
    %c0_11 = arith.constant 0 : index
    %8 = vector.load %arg0[%c0_10, %c0_11] : memref<48x128xf32, #tpu.memory_space<vmem>>, vector<48x128xf32>
    %cst = arith.constant dense<0.000000e+00> : vector<48x768xf32>
    %9 = tpu.matmul %8, %0, %cst {dimension_numbers = #tpu.dot_dimension_numbers<[1], [0], [0], [1], [0, 0, 1, 1], [], []>} : vector<48x128xf32>, vector<128x768xf32>, vector<48x768xf32> -> vector<48x768xf32>
    %10 = vector.broadcast %2 : vector<1x768xf32> to vector<48x768xf32>
    %11 = arith.addf %9, %10 : vector<48x768xf32>
    %12 = vector.extract_strided_slice %11 {offsets = [0, 128], sizes = [48, 128], strides = [1, 1]} : vector<48x768xf32> to vector<48x128xf32>
    %cst_12 = arith.constant dense<0.000000e+00> : vector<48x128xf32>
    %13 = tpu.matmul %4, %12, %cst_12 {dimension_numbers = #tpu.dot_dimension_numbers<[1], [0], [0], [1], [0, 0, 1, 1], [], []>} : vector<48x48xf32>, vector<48x128xf32>, vector<48x128xf32> -> vector<48x128xf32>
    %14 = vector.extract_strided_slice %11 {offsets = [0, 256], sizes = [48, 128], strides = [1, 1]} : vector<48x768xf32> to vector<48x128xf32>
    %cst_13 = arith.constant dense<0.000000e+00> : vector<48x128xf32>
    %15 = tpu.matmul %5, %14, %cst_13 {dimension_numbers = #tpu.dot_dimension_numbers<[1], [0], [0], [1], [0, 0, 1, 1], [], []>} : vector<48x48xf32>, vector<48x128xf32>, vector<48x128xf32> -> vector<48x128xf32>
    %16 = arith.addf %13, %15 : vector<48x128xf32>
    %17 = vector.extract_strided_slice %11 {offsets = [0, 384], sizes = [48, 128], strides = [1, 1]} : vector<48x768xf32> to vector<48x128xf32>
    %cst_14 = arith.constant dense<0.000000e+00> : vector<48x128xf32>
    %18 = tpu.matmul %6, %17, %cst_14 {dimension_numbers = #tpu.dot_dimension_numbers<[1], [0], [0], [1], [0, 0, 1, 1], [], []>} : vector<48x48xf32>, vector<48x128xf32>, vector<48x128xf32> -> vector<48x128xf32>
    %19 = arith.addf %16, %18 : vector<48x128xf32>
    %20 = vector.extract_strided_slice %11 {offsets = [0, 512], sizes = [48, 128], strides = [1, 1]} : vector<48x768xf32> to vector<48x128xf32>
    %cst_15 = arith.constant dense<0.000000e+00> : vector<48x128xf32>
    %21 = tpu.matmul %7, %20, %cst_15 {dimension_numbers = #tpu.dot_dimension_numbers<[1], [0], [0], [1], [0, 0, 1, 1], [], []>} : vector<48x48xf32>, vector<48x128xf32>, vector<48x128xf32> -> vector<48x128xf32>
    %22 = arith.addf %19, %21 : vector<48x128xf32>
    %23 = vector.extract_strided_slice %11 {offsets = [0, 0], sizes = [48, 128], strides = [1, 1]} : vector<48x768xf32> to vector<48x128xf32>
    %24 = arith.addf %23, %22 : vector<48x128xf32>
    %cst_16 = arith.constant dense<0.000000e+00> : vector<48x128xf32>
    %25 = tpu.matmul %24, %1, %cst_16 {dimension_numbers = #tpu.dot_dimension_numbers<[1], [0], [0], [1], [0, 0, 1, 1], [], []>} : vector<48x128xf32>, vector<128x128xf32>, vector<48x128xf32> -> vector<48x128xf32>
    %26 = vector.extract_strided_slice %11 {offsets = [0, 640], sizes = [48, 128], strides = [1, 1]} : vector<48x768xf32> to vector<48x128xf32>
    %27 = arith.addf %25, %26 : vector<48x128xf32>
    %28 = vector.broadcast %3 : vector<1x128xf32> to vector<48x128xf32>
    %29 = arith.addf %27, %28 : vector<48x128xf32>
    %30 = arith.negf %29 : vector<48x128xf32>
    %31 = math.exp %30 : vector<48x128xf32>
    %cst_17 = arith.constant 1.000000e+00 : f32
    %32 = vector.broadcast %cst_17 : f32 to vector<48x128xf32>
    %33 = arith.addf %32, %31 : vector<48x128xf32>
    %34 = arith.divf %32, %33 : vector<48x128xf32>
    %cst_18 = arith.constant 0.000000e+00 : f32
    %35 = vector.broadcast %cst_18 : f32 to vector<48x128xf32>
    %36 = arith.maximumf %24, %35 : vector<48x128xf32>
    %37 = arith.mulf %36, %34 : vector<48x128xf32>
    %cst_19 = arith.constant 1.000000e+00 : f32
    %38 = vector.broadcast %cst_19 : f32 to vector<48x128xf32>
    %39 = arith.subf %38, %34 : vector<48x128xf32>
    %40 = arith.mulf %8, %39 : vector<48x128xf32>
    %41 = arith.addf %37, %40 : vector<48x128xf32>
    %cst_20 = arith.constant dense<0.000000e+00> : vector<48x768xf32>
    %42 = tpu.matmul %41, %0, %cst_20 {dimension_numbers = #tpu.dot_dimension_numbers<[1], [0], [0], [1], [0, 0, 1, 1], [], []>} : vector<48x128xf32>, vector<128x768xf32>, vector<48x768xf32> -> vector<48x768xf32>
    %43 = vector.broadcast %2 : vector<1x768xf32> to vector<48x768xf32>
    %44 = arith.addf %42, %43 : vector<48x768xf32>
    %45 = vector.extract_strided_slice %44 {offsets = [0, 128], sizes = [48, 128], strides = [1, 1]} : vector<48x768xf32> to vector<48x128xf32>
    %cst_21 = arith.constant dense<0.000000e+00> : vector<48x128xf32>
    %46 = tpu.matmul %4, %45, %cst_21 {dimension_numbers = #tpu.dot_dimension_numbers<[1], [0], [0], [1], [0, 0, 1, 1], [], []>} : vector<48x48xf32>, vector<48x128xf32>, vector<48x128xf32> -> vector<48x128xf32>
    %47 = vector.extract_strided_slice %44 {offsets = [0, 256], sizes = [48, 128], strides = [1, 1]} : vector<48x768xf32> to vector<48x128xf32>
    %cst_22 = arith.constant dense<0.000000e+00> : vector<48x128xf32>
    %48 = tpu.matmul %5, %47, %cst_22 {dimension_numbers = #tpu.dot_dimension_numbers<[1], [0], [0], [1], [0, 0, 1, 1], [], []>} : vector<48x48xf32>, vector<48x128xf32>, vector<48x128xf32> -> vector<48x128xf32>
    %49 = arith.addf %46, %48 : vector<48x128xf32>
    %50 = vector.extract_strided_slice %44 {offsets = [0, 384], sizes = [48, 128], strides = [1, 1]} : vector<48x768xf32> to vector<48x128xf32>
    %cst_23 = arith.constant dense<0.000000e+00> : vector<48x128xf32>
    %51 = tpu.matmul %6, %50, %cst_23 {dimension_numbers = #tpu.dot_dimension_numbers<[1], [0], [0], [1], [0, 0, 1, 1], [], []>} : vector<48x48xf32>, vector<48x128xf32>, vector<48x128xf32> -> vector<48x128xf32>
    %52 = arith.addf %49, %51 : vector<48x128xf32>
    %53 = vector.extract_strided_slice %44 {offsets = [0, 512], sizes = [48, 128], strides = [1, 1]} : vector<48x768xf32> to vector<48x128xf32>
    %cst_24 = arith.constant dense<0.000000e+00> : vector<48x128xf32>
    %54 = tpu.matmul %7, %53, %cst_24 {dimension_numbers = #tpu.dot_dimension_numbers<[1], [0], [0], [1], [0, 0, 1, 1], [], []>} : vector<48x48xf32>, vector<48x128xf32>, vector<48x128xf32> -> vector<48x128xf32>
    %55 = arith.addf %52, %54 : vector<48x128xf32>
    %56 = vector.extract_strided_slice %44 {offsets = [0, 0], sizes = [48, 128], strides = [1, 1]} : vector<48x768xf32> to vector<48x128xf32>
    %57 = arith.addf %56, %55 : vector<48x128xf32>
    %cst_25 = arith.constant dense<0.000000e+00> : vector<48x128xf32>
    %58 = tpu.matmul %57, %1, %cst_25 {dimension_numbers = #tpu.dot_dimension_numbers<[1], [0], [0], [1], [0, 0, 1, 1], [], []>} : vector<48x128xf32>, vector<128x128xf32>, vector<48x128xf32> -> vector<48x128xf32>
    %59 = vector.extract_strided_slice %44 {offsets = [0, 640], sizes = [48, 128], strides = [1, 1]} : vector<48x768xf32> to vector<48x128xf32>
    %60 = arith.addf %58, %59 : vector<48x128xf32>
    %61 = vector.broadcast %3 : vector<1x128xf32> to vector<48x128xf32>
    %62 = arith.addf %60, %61 : vector<48x128xf32>
    %63 = arith.negf %62 : vector<48x128xf32>
    %64 = math.exp %63 : vector<48x128xf32>
    %cst_26 = arith.constant 1.000000e+00 : f32
    %65 = vector.broadcast %cst_26 : f32 to vector<48x128xf32>
    %66 = arith.addf %65, %64 : vector<48x128xf32>
    %67 = arith.divf %65, %66 : vector<48x128xf32>
    %cst_27 = arith.constant 0.000000e+00 : f32
    %68 = vector.broadcast %cst_27 : f32 to vector<48x128xf32>
    %69 = arith.maximumf %57, %68 : vector<48x128xf32>
    %70 = arith.mulf %69, %67 : vector<48x128xf32>
    %cst_28 = arith.constant 1.000000e+00 : f32
    %71 = vector.broadcast %cst_28 : f32 to vector<48x128xf32>
    %72 = arith.subf %71, %67 : vector<48x128xf32>
    %73 = arith.mulf %41, %72 : vector<48x128xf32>
    %74 = arith.addf %70, %73 : vector<48x128xf32>
    %c0_29 = arith.constant 0 : index
    %c0_30 = arith.constant 0 : index
    %75 = vector.load %arg3[%c0_29, %c0_30] : memref<48x128xf32, #tpu.memory_space<vmem>>, vector<48x128xf32>
    tpu.vector_store %arg3[%c0_29, %c0_30], %74 {strides = array<i32>} : memref<48x128xf32, #tpu.memory_space<vmem>>, vector<48x128xf32>,
    return
  }
}

</mosaic_0001>

<bundles_post_ra>
// kernel: custom-call
= control target key start
LH: loop header
LB: loop body
LE: loop exit
PB: predicated region body
PF: predicated region fallthrough
CT: control target
= control target key end

     0   :  { %s6_s0 = inlined_call_operand.vmem [shape: f32[896], index: 0, kind: output, shape index: {}]  }

// kernel: multi_relational_gcn.1
= control target key start
LH: loop header
LB: loop body
LE: loop exit
PB: predicated region body
PF: predicated region fallthrough
CT: control target
= control target key end

     0   :  { %vm384_vm0 = vcmask 392192   ;;  %s2977_s2 = inlined_call_operand.vmem [shape: f32[136,896], index: 2, kind: input, shape index: {}]   ;;  %s2978_s0 = inlined_call_operand.vmem [shape: f32[48,128], index: 0, kind: input, shape index: {}]   ;;  %s2979_s1 = inlined_call_operand.vmem [shape: f32[192,48], index: 1, kind: input, shape index: {}]   ;;  %s2980_s3 = inlined_call_operand.vmem [shape: f32[48,128], index: 3, kind: output, shape index: {}]  }
   0x1   :  { %v1544_v0 = vld [vmem:[%s2977_s2 + $0x350] sm:$0xff]  ;;  %v1549_v1 = vld [vmem:[%s2977_s2 + $0x358] sm:$0xff]  ;;  %v107_v2 = vld [vmem:[%s2977_s2 + $0x360] sm:$0xff] }
   0x2   :  { %209 = vmatpush.msra.mxu1 %v1544_v0  ;;  %244 = vmatpush.msra.mxu2 %v1549_v1  ;;  %v1559_v3 = vld [vmem:[%s2977_s2 + $0x318] sm:$0xff]  ;;  %v1564_v4 = vld [vmem:[%s2977_s2 + $0x320] sm:$0xff]  ;;  %v101_v5 = vld [vmem:[%s2977_s2 + $0x328] sm:$0xff] }
   0x3   :  { %279 = vmatpush.msra.mxu3 %v107_v2  ;;  %v1572_v6 = vld [vmem:[%s2977_s2 + $0x2e0] sm:$0xff]  ;;  %v1577_v7 = vld [vmem:[%s2977_s2 + $0x2e8] sm:$0xff]  ;;  %v1584_v8 = vld [vmem:[%s2977_s2 + $0x2f0] sm:$0xff] }
   0x4   :  { %210 = vmatpush.msra.mxu1 %v1559_v3  ;;  %245 = vmatpush.msra.mxu2 %v1564_v4  ;;  %3051 = vst [vmem:[#allocation2_spill] sm:$0xff] %v1584_v8  ;;  %v1589_v9 = vld [vmem:[%s2977_s2 + $0x2a8] sm:$0xff]  ;;  %v1594_v10 = vld [vmem:[%s2977_s2 + $0x2b0] sm:$0xff]  ;;  %v1601_v11 = vld [vmem:[%s2977_s2 + $0x2b8] sm:$0xff] }
   0x5   :  { %280 = vmatpush.msra.mxu3 %v101_v5  ;;  %3052 = vst [vmem:[#allocation3_spill] sm:$0xff] %v1601_v11  ;;  %v1607_v12 = vld [vmem:[%s2977_s2 + $0x270] sm:$0xff]  ;;  %v1612_v13 = vld [vmem:[%s2977_s2 + $0x278] sm:$0xff]  ;;  %v1617_v14 = vld [vmem:[%s2977_s2 + $0x348] sm:$0xff] }
   0x6   :  { %211 = vmatpush.msra.mxu1 %v1572_v6  ;;  %246 = vmatpush.msra.mxu2 %v1577_v7  ;;  %v1624_v15 = vld [vmem:[%s2977_s2 + $0x280] sm:$0xff]  ;;  %v1629_v16 = vld [vmem:[%s2977_s2 + $0x310] sm:$0xff]  ;;  %v1635_v17 = vld [vmem:[%s2977_s2 + $0x238] sm:$0xff] }
   0x7   :  { %281 = vmatpush.msra.mxu3 %v1584_v8  ;;  %3053 = vst [vmem:[#allocation4_spill] sm:$0xff] %v1624_v15  ;;  %v1640_v18 = vld [vmem:[%s2977_s2 + $0x240] sm:$0xff]  ;;  %174 = vmatpush.msra.mxu0 %v1617_v14  ;;  %v1648_v19 = vld [vmem:[%s2977_s2 + $0x248] sm:$0xff]  ;;  %v1653_v20 = vld [vmem:[%s2977_s2 + $0x2d8] sm:$0xff] }
   0x8   :  { %212 = vmatpush.msra.mxu1 %v1589_v9  ;;  %247 = vmatpush.msra.mxu2 %v1594_v10  ;;  %3054 = vst [vmem:[#allocation5_spill] sm:$0xff] %v1648_v19  ;;  %v1659_v21 = vld [vmem:[%s2977_s2 + $0x200] sm:$0xff]  ;;  %v1664_v22 = vld [vmem:[%s2977_s2 + $0x208] sm:$0xff]  ;;  %v1672_v23 = vld [vmem:[%s2977_s2 + $0x210] sm:$0xff] }
   0x9   :  { %282 = vmatpush.msra.mxu3 %v1601_v11  ;;  %3055 = vst [vmem:[#allocation6_spill] sm:$0xff] %v1664_v22  ;;  %175 = vmatpush.msra.mxu0 %v1629_v16  ;;  %v1677_v24 = vld [vmem:[%s2977_s2 + $0x2a0] sm:$0xff]  ;;  %v1683_v25 = vld [vmem:[%s2977_s2 + $0x1c8] sm:$0xff]  ;;  %v1688_v26 = vld [vmem:[%s2977_s2 + $0x1d0] sm:$0xff] }
   0xa   :  { %213 = vmatpush.msra.mxu1 %v1607_v12  ;;  %248 = vmatpush.msra.mxu2 %v1612_v13  ;;  %3056 = vst [vmem:[#allocation7_spill] sm:$0xff] %v1672_v23  ;;  %v1696_v27 = vld [vmem:[%s2977_s2 + $0x1d8] sm:$0xff]  ;;  %v1701_v28 = vld [vmem:[%s2977_s2 + $0x268] sm:$0xff]  ;;  %v1707_v29 = vld [vmem:[%s2977_s2 + $0x190] sm:$0xff] }
   0xb   :  { %283 = vmatpush.msra.mxu3 %v1624_v15  ;;  %3057 = vst [vmem:[#allocation8_spill] sm:$0xff] %v1688_v26  ;;  %176 = vmatpush.msra.mxu0 %v1653_v20  ;;  %v1712_v30 = vld [vmem:[%s2977_s2 + $0x198] sm:$0xff]  ;;  %v1720_v31 = vld [vmem:[%s2977_s2 + $0x1a0] sm:$0xff]  ;;  %v1725_v32 = vld [vmem:[%s2977_s2 + $0x230] sm:$0xff] }
   0xc   :  { %214 = vmatpush.msra.mxu1 %v1635_v17  ;;  %249 = vmatpush.msra.mxu2 %v1640_v18  ;;  %3058 = vst [vmem:[#allocation9_spill] sm:$0xff] %v1696_v27  ;;  %v1731_v33 = vld [vmem:[%s2977_s2 + $0x158] sm:$0xff]  ;;  %v1736_v34 = vld [vmem:[%s2977_s2 + $0x160] sm:$0xff]  ;;  %v1744_v35 = vld [vmem:[%s2977_s2 + $0x168] sm:$0xff] }
   0xd   :  { %284 = vmatpush.msra.mxu3 %v1648_v19  ;;  %3059 = vst [vmem:[#allocation10_spill] sm:$0xff] %v1712_v30  ;;  %177 = vmatpush.msra.mxu0 %v1677_v24  ;;  %v1749_v36 = vld [vmem:[%s2977_s2 + $0x1f8] sm:$0xff]  ;;  %v1755_v37 = vld [vmem:[%s2977_s2 + $0x120] sm:$0xff]  ;;  %v1760_v38 = vld [vmem:[%s2977_s2 + $0x128] sm:$0xff] }
   0xe   :  { %215 = vmatpush.msra.mxu1 %v1659_v21  ;;  %250 = vmatpush.msra.mxu2 %v1664_v22  ;;  %3060 = vst [vmem:[#allocation11_spill] sm:$0xff] %v1720_v31  ;;  %v1768_v39 = vld [vmem:[%s2977_s2 + $0x130] sm:$0xff]  ;;  %v1773_v40 = vld [vmem:[%s2977_s2 + $0x1c0] sm:$0xff]  ;;  %v1779_v41 = vld [vmem:[%s2977_s2 + $0xe8] sm:$0xff] }
   0xf   :  { %285 = vmatpush.msra.mxu3 %v1672_v23  ;;  %3061 = vst [vmem:[#allocation12_spill] sm:$0xff] %v1736_v34  ;;  %178 = vmatpush.msra.mxu0 %v1701_v28  ;;  %v1784_v42 = vld [vmem:[%s2977_s2 + $0xf0] sm:$0xff]  ;;  %v1792_v43 = vld [vmem:[%s2977_s2 + $0xf8] sm:$0xff]  ;;  %v1797_v44 = vld [vmem:[%s2977_s2 + $0x188] sm:$0xff] }
  0x10   :  { %216 = vmatpush.msra.mxu1 %v1683_v25  ;;  %251 = vmatpush.msra.mxu2 %v1688_v26  ;;  %3062 = vst [vmem:[#allocation13_spill] sm:$0xff] %v1744_v35  ;;  %v1803_v45 = vld [vmem:[%s2977_s2 + $0xb0] sm:$0xff]  ;;  %v1808_v46 = vld [vmem:[%s2977_s2 + $0xb8] sm:$0xff]  ;;  %v1816_v47 = vld [vmem:[%s2977_s2 + $0xc0] sm:$0xff] }
  0x11   :  { %286 = vmatpush.msra.mxu3 %v1696_v27  ;;  %3063 = vst [vmem:[#allocation14_spill] sm:$0xff] %v1760_v38  ;;  %179 = vmatpush.msra.mxu0 %v1725_v32  ;;  %v1821_v48 = vld [vmem:[%s2977_s2 + $0x150] sm:$0xff]  ;;  %v1827_v49 = vld [vmem:[%s2977_s2 + $0x78] sm:$0xff]  ;;  %v1832_v50 = vld [vmem:[%s2977_s2 + $0x80] sm:$0xff] }
  0x12   :  { %217 = vmatpush.msra.mxu1 %v1707_v29  ;;  %252 = vmatpush.msra.mxu2 %v1712_v30  ;;  %3064 = vst [vmem:[#allocation15_spill] sm:$0xff] %v1768_v39  ;;  %v1840_v51 = vld [vmem:[%s2977_s2 + $0x88] sm:$0xff]  ;;  %v1845_v52 = vld [vmem:[%s2977_s2 + $0x118] sm:$0xff]  ;;  %v1851_v53 = vld [vmem:[%s2977_s2 + $0x40] sm:$0xff] }
  0x13   :  { %287 = vmatpush.msra.mxu3 %v1720_v31  ;;  %3065 = vst [vmem:[#allocation16_spill] sm:$0xff] %v1784_v42  ;;  %180 = vmatpush.msra.mxu0 %v1749_v36  ;;  %v1856_v54 = vld [vmem:[%s2977_s2 + $0x48] sm:$0xff]  ;;  %v1864_v55 = vld [vmem:[%s2977_s2 + $0x50] sm:$0xff]  ;;  %v1869_v56 = vld [vmem:[%s2977_s2 + $0xe0] sm:$0xff] }
  0x14   :  { %218 = vmatpush.msra.mxu1 %v1731_v33  ;;  %253 = vmatpush.msra.mxu2 %v1736_v34  ;;  %3066 = vst [vmem:[#allocation17_spill] sm:$0xff] %v1792_v43  ;;  %v1875_v57 = vld [vmem:[%s2977_s2 + $0x8] sm:$0xff]  ;;  %v1880_v58 = vld [vmem:[%s2977_s2 + $0x10] sm:$0xff]  ;;  %v1888_v59 = vld [vmem:[%s2977_s2 + $0x18] sm:$0xff] }
  0x15   :  { %288 = vmatpush.msra.mxu3 %v1744_v35  ;;  %3067 = vst [vmem:[#allocation18_spill] sm:$0xff] %v1808_v46  ;;  %181 = vmatpush.msra.mxu0 %v1773_v40  ;;  %v1893_v60 = vld [vmem:[%s2978_s0] sm:$0xff]  ;;  %v1902_v61 = vld [vmem:[%s2977_s2 + $0xa8] sm:$0xff]  ;;  %v1916_v63 = vld [vmem:[%s2977_s2 + $0x70] sm:$0xff] }
  0x16   :  { %219 = vmatpush.msra.mxu1 %v1755_v37  ;;  %254 = vmatpush.msra.mxu2 %v1760_v38  ;;  %3068 = vst [vmem:[#allocation19_spill] sm:$0xff] %v1816_v47  ;;  %v1907_v62 = vld [vmem:[%s2977_s2 + $0x368] sm:$0xff]  ;;  %v1921_v2 = vld [vmem:[%s2977_s2 + $0x330] sm:$0xff]  ;;  %v1928_v5 = vld [vmem:[%s2977_s2 + $0x38] sm:$0xff] }
  0x17   :  { %289 = vmatpush.msra.mxu3 %v1768_v39  ;;  %3069 = vst [vmem:[#allocation20_spill] sm:$0xff] %v1832_v50  ;;  %182 = vmatpush.msra.mxu0 %v1797_v44  ;;  %v1968_v39 = vld [vmem:[%s2977_s2 + $0x250] sm:$0xff]  ;;  %v1980_v31 = vld [vmem:[%s2977_s2 + $0x218] sm:$0xff]  ;;  %v1987_v27 = vld [vmem:[%s2977_s2 + $0x1e0] sm:$0xff] }
  0x18   :  { %220 = vmatpush.msra.mxu1 %v1779_v41  ;;  %255 = vmatpush.msra.mxu2 %v1784_v42  ;;  %3070 = vst [vmem:[#allocation21_spill] sm:$0xff] %v1840_v51  ;;  %v1975_v35 = vld [vmem:[%s2978_s0 + $0x10] sm:$0xff]  ;;  %v1997_v23 = vld [vmem:[%s2977_s2 + $0x1a8] sm:$0xff]  ;;  %v2011_v15 = vld [vmem:[%s2978_s0 + $0x18] sm:$0xff] }
  0x19   :  { %290 = vmatpush.msra.mxu3 %v1792_v43  ;;  %3071 = vst [vmem:[#allocation22_spill] sm:$0xff] %v1856_v54  ;;  %183 = vmatpush.msra.mxu0 %v1821_v48  ;;  %v1961_v43 = vld [vmem:[%s2977_s2 + $0x288] sm:$0xff]  ;;  %v2005_v19 = vld [vmem:[%s2977_s2 + $0x170] sm:$0xff]  ;;  %v2017_v11 = vld [vmem:[%s2977_s2 + $0x138] sm:$0xff] }
  0x1a   :  { %221 = vmatpush.msra.mxu1 %v1803_v45  ;;  %256 = vmatpush.msra.mxu2 %v1808_v46  ;;  %3072 = vst [vmem:[#allocation23_spill] sm:$0xff] %v1864_v55  ;;  %v2024_v8 = vld [vmem:[%s2977_s2 + $0x100] sm:$0xff]  ;;  %v2053_v46 = vld [vmem:[%s2977_s2 + $0x58] sm:$0xff] }
  0x1b   :  { %291 = vmatpush.msra.mxu3 %v1816_v47  ;;  %3073 = vst [vmem:[#allocation24_spill] sm:$0xff] %v1875_v57  ;;  %184 = vmatpush.msra.mxu0 %v1845_v52  ;;  %v1952_v47 = vld [vmem:[%s2977_s2 + $0x2c0] sm:$0xff] }
  0x1c   :  { %222 = vmatpush.msra.mxu1 %v1827_v49  ;;  %257 = vmatpush.msra.mxu2 %v1832_v50  ;;  %3074 = vst [vmem:[#allocation25_spill] sm:$0xff] %v1880_v58  ;;  %v2047_v50 = vld [vmem:[%s2978_s0 + $0x20] sm:$0xff] }
  0x1d   :  { %292 = vmatpush.msra.mxu3 %v1840_v51  ;;  %3075 = vst [vmem:[#allocation26_spill] sm:$0xff] %v1888_v59  ;;  %185 = vmatpush.msra.mxu0 %v1869_v56  ;;  %v1945_v51 = vld [vmem:[%s2977_s2] sm:$0xff] }
  0x1e   :  { %223 = vmatpush.msra.mxu1 %v1851_v53  ;;  %258 = vmatpush.msra.mxu2 %v1856_v54  ;;  %3076 = vst [vmem:[#allocation27_spill] sm:$0xff] %v1907_v62  ;;  %v2041_v54 = vld [vmem:[%s2977_s2 + $0x90] sm:$0xff]  ;;  %v2166_v42 = vld [vmem:[%s2977_s2 + $0x140] sm:$0xff] }
  0x1f   :  { %293 = vmatpush.msra.mxu3 %v1864_v55  ;;  %3077 = vst [vmem:[#allocation28_spill] sm:$0xff] %v1921_v2  ;;  %186 = vmatpush.msra.mxu0 %v1902_v61  ;;  %v1940_v55 = vld [vmem:[%s2978_s0 + $0x8] sm:$0xff] }
  0x20   :  { %224 = vmatpush.msra.mxu1 %v1875_v57  ;;  %259 = vmatpush.msra.mxu2 %v1880_v58  ;;  %3079 = vst [vmem:[#allocation30_spill] sm:$0xff] %v1945_v51  ;;  %v2033_v58 = vld [vmem:[%s2977_s2 + $0xc8] sm:$0xff] }
  0x21   :  { %294 = vmatpush.msra.mxu3 %v1888_v59  ;;  %225 = vmatmul.f32.vlgmr.msra.gmra.mxu1 %v1893_v60  ;;  %v1933_v59 = vld [vmem:[%s2977_s2 + $0x2f8] sm:$0xff]  ;;  %3080 = vst [vmem:[#allocation31_spill] sm:$0xff] %v1952_v47 }
  0x22   :  { %260 = vmatmul.f32.vlgmr.msra.gmra.mxu2 %v1893_v60  ;;  %295 = vmatmul.f32.vlgmr.msra.gmra.mxu3 %v1893_v60  ;;  %3078 = vst [vmem:[#allocation29_spill] sm:$0xff] %v1933_v59 }
  0x23   :  { %1425 = vmatpush.msrb.mxu2 %v1907_v62  ;;  %187 = vmatpush.msra.mxu0 %v1916_v63  ;;  %3081 = vst [vmem:[#allocation32_spill] sm:$0xff] %v1961_v43 }
  0x24   :  { %3082 = vst [vmem:[#allocation33_spill] sm:$0xff] %v1968_v39 }
  0x25   :  { %1426 = vmatpush.msrb.mxu2 %v1921_v2  ;;  %188 = vmatpush.msra.mxu0 %v1928_v5  ;;  %3083 = vst [vmem:[#allocation34_spill] sm:$0xff] %v1980_v31 }
  0x26   :  { %3084 = vst [vmem:[#allocation35_spill] sm:$0xff] %v1987_v27 }
  0x27   :  { %1427 = vmatpush.msrb.mxu2 %v1933_v59  ;;  %189 = vmatpush.msra.mxu0 %v1945_v51  ;;  %3085 = vst [vmem:[#allocation36_spill] sm:$0xff] %v1997_v23 }
  0x28   :  { %190 = vmatmul.f32.vlgmr.msra.gmra.mxu0 %v1893_v60  ;;  %3086 = vst [vmem:[#allocation37_spill] sm:$0xff] %v2005_v19 }
  0x29   :  { %228 = vmatmul.f32.gmra.mxu1 %v1940_v55  ;;  %1428 = vmatpush.msrb.mxu2 %v1952_v47  ;;  %3087 = vst [vmem:[#allocation38_spill] sm:$0xff] %v2017_v11 }
  0x2a   :  { %263 = vmatmul.f32.gmra.mxu2 %v1940_v55  ;;  %298 = vmatmul.f32.gmra.mxu3 %v1940_v55  ;;  %3088 = vst [vmem:[#allocation39_spill] sm:$0xff] %v2024_v8 }
  0x2b   :  { %314 = vmatpush.msrb.mxu0 %v1907_v62  ;;  %1429 = vmatpush.msrb.mxu2 %v1961_v43  ;;  %3089 = vst [vmem:[#allocation40_spill] sm:$0xff] %v2033_v58 }
  0x2c   :  { %3090 = vst [vmem:[#allocation41_spill] sm:$0xff] %v2041_v54 }
  0x2d   :  { %315 = vmatpush.msrb.mxu0 %v1921_v2  ;;  %1430 = vmatpush.msrb.mxu2 %v1968_v39  ;;  %3091 = vst [vmem:[#allocation42_spill] sm:$0xff] %v2053_v46 }
  0x2e   :  { %3103 = vst [vmem:[#allocation54_spill] sm:$0xff] %v2166_v42 }
  0x2f   :  { %316 = vmatpush.msrb.mxu0 %v1933_v59  ;;  %1431 = vmatpush.msrb.mxu2 %v1980_v31 }
  0x30   :  { %193 = vmatmul.f32.gmra.mxu0 %v1940_v55 }
  0x31   :  { %231 = vmatmul.f32.gmra.mxu1 %v1975_v35  ;;  %1432 = vmatpush.msrb.mxu2 %v1987_v27 }
  0x32   :  { %266 = vmatmul.f32.gmra.mxu2 %v1975_v35  ;;  %301 = vmatmul.f32.gmra.mxu3 %v1975_v35 }
  0x33   :  { %317 = vmatpush.msrb.mxu0 %v1952_v47  ;;  %1433 = vmatpush.msrb.mxu2 %v1997_v23 }
  0x35   :  { %318 = vmatpush.msrb.mxu0 %v1961_v43  ;;  %1434 = vmatpush.msrb.mxu2 %v2005_v19 }
  0x37   :  { %319 = vmatpush.msrb.mxu0 %v1968_v39  ;;  %1435 = vmatpush.msrb.mxu2 %v2017_v11  ;;  %v2157_v39 = vld [vmem:[%s2977_s2 + $0x178] sm:$0xff] }
  0x38   :  { %196 = vmatmul.f32.gmra.mxu0 %v1975_v35  ;;  %3102 = vst [vmem:[#allocation53_spill] sm:$0xff] %v2157_v39 }
  0x39   :  { %234 = vmatmul.f32.gmra.mxu1 %v2011_v15  ;;  %1436 = vmatpush.msrb.mxu2 %v2024_v8 }
  0x3a   :  { %269 = vmatmul.f32.gmra.mxu2 %v2011_v15  ;;  %304 = vmatmul.f32.gmra.mxu3 %v2011_v15 }
  0x3b   :  { %320 = vmatpush.msrb.mxu0 %v1980_v31  ;;  %1437 = vmatpush.msrb.mxu2 %v2033_v58  ;;  %v2060_v31 = vld [vmem:[%s2977_s2 + $0x20] sm:$0xff] }
  0x3c   :  { %3092 = vst [vmem:[#allocation43_spill] sm:$0xff] %v2060_v31 }
  0x3d   :  { %321 = vmatpush.msrb.mxu0 %v1987_v27  ;;  %1438 = vmatpush.msrb.mxu2 %v2041_v54  ;;  %v2142_v27 = vld [vmem:[%s2977_s2 + $0x1e8] sm:$0xff] }
  0x3e   :  { %3100 = vst [vmem:[#allocation51_spill] sm:$0xff] %v2142_v27 }
  0x3f   :  { %322 = vmatpush.msrb.mxu0 %v1997_v23  ;;  %1439 = vmatpush.msrb.mxu2 %v2053_v46  ;;  %v2072_v23 = vld [vmem:[%s2978_s0 + $0x28] sm:$0xff] }
  0x40   :  { %199 = vmatmul.f32.gmra.mxu0 %v2011_v15 }
  0x41   :  { %237 = vmatmul.f32.gmra.mxu1 %v2047_v50  ;;  %1440 = vmatpush.msrb.mxu2 %v2060_v31 }
  0x42   :  { %272 = vmatmul.f32.gmra.mxu2 %v2047_v50  ;;  %307 = vmatmul.f32.gmra.mxu3 %v2047_v50 }
  0x43   :  { %323 = vmatpush.msrb.mxu0 %v2005_v19  ;;  %v2136_v19 = vld [vmem:[%s2977_s2 + $0x220] sm:$0xff] }
  0x44   :  { %3099 = vst [vmem:[#allocation50_spill] sm:$0xff] %v2136_v19 }
  0x45   :  { %324 = vmatpush.msrb.mxu0 %v2017_v11  ;;  %v2129_v11 = vld [vmem:[%s2977_s2 + $0x258] sm:$0xff] }
  0x46   :  { %3098 = vst [vmem:[#allocation49_spill] sm:$0xff] %v2129_v11 }
  0x47   :  { %325 = vmatpush.msrb.mxu0 %v2024_v8  ;;  %v2121_v8 = vld [vmem:[%s2977_s2 + $0x290] sm:$0xff] }
  0x48   :  { %202 = vmatmul.f32.gmra.mxu0 %v2047_v50  ;;  %3097 = vst [vmem:[#allocation48_spill] sm:$0xff] %v2121_v8 }
  0x49   :  { %240 = vmatmul.f32.gmra.mxu1 %v2072_v23  ;;  %326 = vmatpush.msrb.mxu0 %v2033_v58  ;;  %v2114_v58 = vld [vmem:[%s2977_s2 + $0x2c8] sm:$0xff] }
  0x4a   :  { %275 = vmatmul.f32.gmra.mxu2 %v2072_v23  ;;  %310 = vmatmul.f32.gmra.mxu3 %v2072_v23  ;;  %3096 = vst [vmem:[#allocation47_spill] sm:$0xff] %v2114_v58 }
  0x4b   :  { %327 = vmatpush.msrb.mxu0 %v2041_v54  ;;  %v2108_v54 = vld [vmem:[%s2977_s2 + $0x300] sm:$0xff] }
  0x4c   :  { %3095 = vst [vmem:[#allocation46_spill] sm:$0xff] %v2108_v54 }
  0x4d   :  { %328 = vmatpush.msrb.mxu0 %v2053_v46  ;;  %v2094_v46 = vld [vmem:[%s2977_s2 + $0x370] sm:$0xff] }
  0x4e   :  { %3093 = vst [vmem:[#allocation44_spill] sm:$0xff] %v2094_v46  ;;  %1441 = vmatpush.msrb.mxu3 %v2094_v46  ;;  %349 = vmatpush.msrb.mxu1 %v2094_v46 }
  0x4f   :  { %329 = vmatpush.msrb.mxu0 %v2060_v31  ;;  %v2101_v31 = vld [vmem:[%s2977_s2 + $0x338] sm:$0xff] }
  0x50   :  { %205 = vmatmul.f32.gmra.mxu0 %v2072_v23  ;;  %3094 = vst [vmem:[#allocation45_spill] sm:$0xff] %v2101_v31  ;;  %1442 = vmatpush.msrb.mxu3 %v2101_v31 }
  0x51   :  { %350 = vmatpush.msrb.mxu1 %v2101_v31 }
  0x52   :  { %339 = vmatmul.f32.vlgmr.msrb.gmra.mxu2 %v2011_v15  ;;  %1443 = vmatpush.msrb.mxu3 %v2108_v54 }
  0x53   :  { %351 = vmatpush.msrb.mxu1 %v2108_v54 }
  0x54   :  { %1444 = vmatpush.msrb.mxu3 %v2114_v58 }
  0x55   :  { %352 = vmatpush.msrb.mxu1 %v2114_v58 }
  0x56   :  { %1445 = vmatpush.msrb.mxu3 %v2121_v8 }
  0x57   :  { %353 = vmatpush.msrb.mxu1 %v2121_v8 }
  0x58   :  { %330 = vmatmul.f32.vlgmr.msrb.gmra.mxu0 %v1893_v60  ;;  %1446 = vmatpush.msrb.mxu3 %v2129_v11 }
  0x59   :  { %354 = vmatpush.msrb.mxu1 %v2129_v11  ;;  %v2149_v11 = vld [vmem:[%s2977_s2 + $0x1b0] sm:$0xff] }
  0x5a   :  { %342 = vmatmul.f32.gmra.mxu2 %v2047_v50  ;;  %1447 = vmatpush.msrb.mxu3 %v2136_v19  ;;  %3101 = vst [vmem:[#allocation52_spill] sm:$0xff] %v2149_v11 }
  0x5b   :  { %355 = vmatpush.msrb.mxu1 %v2136_v19 }
  0x5c   :  { %1448 = vmatpush.msrb.mxu3 %v2142_v27 }
  0x5d   :  { %356 = vmatpush.msrb.mxu1 %v2142_v27  ;;  %v2187_v27 = vld [vmem:[%s2977_s2 + $0x98] sm:$0xff] }
  0x5e   :  { %1449 = vmatpush.msrb.mxu3 %v2149_v11  ;;  %3106 = vst [vmem:[#allocation57_spill] sm:$0xff] %v2187_v27 }
  0x5f   :  { %357 = vmatpush.msrb.mxu1 %v2149_v11  ;;  %v2172_v11 = vld [vmem:[%s2977_s2 + $0x108] sm:$0xff] }
  0x60   :  { %333 = vmatmul.f32.gmra.mxu0 %v1940_v55  ;;  %1450 = vmatpush.msrb.mxu3 %v2157_v39  ;;  %3104 = vst [vmem:[#allocation55_spill] sm:$0xff] %v2172_v11 }
  0x61   :  { %358 = vmatpush.msrb.mxu1 %v2157_v39  ;;  %v2179_v39 = vld [vmem:[%s2977_s2 + $0xd0] sm:$0xff] }
  0x62   :  { %345 = vmatmul.f32.gmra.mxu2 %v2072_v23  ;;  %1451 = vmatpush.msrb.mxu3 %v2166_v42  ;;  %3105 = vst [vmem:[#allocation56_spill] sm:$0xff] %v2179_v39 }
  0x63   :  { %359 = vmatpush.msrb.mxu1 %v2166_v42 }
  0x64   :  { %1452 = vmatpush.msrb.mxu3 %v2172_v11 }
  0x65   :  { %360 = vmatpush.msrb.mxu1 %v2172_v11  ;;  %v2198_v11 = vld [vmem:[%s2977_s2 + $0x60] sm:$0xff] }
  0x66   :  { %1453 = vmatpush.msrb.mxu3 %v2179_v39  ;;  %3107 = vst [vmem:[#allocation58_spill] sm:$0xff] %v2198_v11 }
  0x67   :  { %361 = vmatpush.msrb.mxu1 %v2179_v39  ;;  %v2204_v39 = vld [vmem:[%s2977_s2 + $0x28] sm:$0xff] }
  0x68   :  { %336 = vmatmul.f32.gmra.mxu0 %v1975_v35  ;;  %1454 = vmatpush.msrb.mxu3 %v2187_v27  ;;  %3108 = vst [vmem:[#allocation59_spill] sm:$0xff] %v2204_v39 }
  0x69   :  { %362 = vmatpush.msrb.mxu1 %v2187_v27 }
  0x6a   :  { %1455 = vmatpush.msrb.mxu3 %v2198_v11 }
  0x6b   :  { %363 = vmatpush.msrb.mxu1 %v2198_v11 }
  0x6c   :  { %1456 = vmatpush.msrb.mxu3 %v2204_v39 }
  0x6d   :  { %364 = vmatpush.msrb.mxu1 %v2204_v39  ;;  %374 = vmatmul.f32.vlgmr.msrb.gmra.mxu3 %v2011_v15 }
  0x6e   :  { %365 = vmatmul.f32.vlgmr.msrb.gmra.mxu1 %v1893_v60 }
  0x75   :  { %377 = vmatmul.f32.gmra.mxu3 %v2047_v50  ;;  %v1364_v50 = vld [vmem:[%s2977_s2 + $0x380] ss:$8 sm:$0x30] }
  0x76   :  { %368 = vmatmul.f32.gmra.mxu1 %v1940_v55 }
  0x7d   :  { %380 = vmatmul.f32.gmra.mxu3 %v2072_v23 }
  0x7e   :  { %371 = vmatmul.f32.gmra.mxu1 %v1975_v35 }
  0x9e   :  { %v2161_v19 = vpop.f32.mrf.mxu1 }
  0xa5   :  { %v2189_v8 = vpop.f32.mrf.mxu2  ;;  %v2191_v42 = vpop.f32.mrf.mxu3 }
  0xa6   :  { %v229_v43 = vpop.f32.mrf.mxu1  ;;  %v2207_v38 = vpop.f32.mrf.mxu0 }
  0xa7   :  { %3109 = vst [vmem:[#allocation60_spill] sm:$0xff] %v2207_v38 }
  0xad   :  { %v264_v27 = vpop.f32.mrf.mxu2  ;;  %v299_v58 = vpop.f32.mrf.mxu3 }
  0xae   :  { %v232_v47 = vpop.f32.mrf.mxu1  ;;  %v2213_v34 = vpop.f32.mrf.mxu0 }
  0xaf   :  { %3110 = vst [vmem:[#allocation61_spill] sm:$0xff] %v2213_v34  ;;  %v1363_v34 = vld [vmem:[%s2977_s2 + $0x380] ss:$8 sm:$0xf] }
  0xb0   :  { %v2229_v30 = vor.u32 %v1364_v50, %v1363_v34 }
  0xb2   :  { %v2243_v34 = vperm.slane %v2229_v30, 3 }
  0xb5   :  { %v267_v11 = vpop.f32.mrf.mxu2  ;;  %v302_v54 = vpop.f32.mrf.mxu3 }
  0xb6   :  { %v235_v38 = vpop.f32.mrf.mxu1  ;;  %v2217_v59 = vpop.f32.mrf.mxu0 }
  0xb7   :  { %3111 = vst [vmem:[#allocation62_spill] sm:$0xff] %v2217_v59  ;;  %v2232_v59 = vperm.slane %v2229_v30, 1 }
  0xb9   :  { %v236_v22 = vadd.f32 %v235_v38, %v2232_v59  ;;  %v233_v50 = vadd.f32 %v232_v47, %v2232_v59  ;;  %v230_v38 = vadd.f32 %v229_v43, %v2232_v59  ;;  %v131_v43 = vld [vmem:[%s2979_s1] sm:$0xff] }
  0xbd   :  { %v270_v15 = vpop.f32.mrf.mxu2  ;;  %v305_v60 = vpop.f32.mrf.mxu3 }
  0xbe   :  { %v238_v39 = vpop.f32.mrf.mxu1  ;;  %v2227_v55 = vpop.f32.mrf.mxu0 }
  0xbf   :  { %3112 = vst [vmem:[#allocation63_spill] sm:$0xff] %v2227_v55  ;;  %v239_v26 = vadd.f32 %v238_v39, %v2232_v59  ;;  %v2240_v55 = vperm.slane %v2229_v30, 2 }
  0xc1   :  { %v271_v47 = vadd.f32 %v270_v15, %v2240_v55  ;;  %v300_v15 = vadd.f32 %v299_v58, %v2243_v34  ;;  %v144_v58 = vld [vmem:[%s2979_s1 + $0x68] sm:$0xff] }
  0xc5   :  { %v273_v23 = vpop.f32.mrf.mxu2  ;;  %v308_v35 = vpop.f32.mrf.mxu3 }
  0xc6   :  { %v241_v31 = vpop.f32.mrf.mxu1  ;;  %v2236_v46 = vpop.f32.mrf.mxu0  ;;  %v309_v39 = vadd.f32 %v308_v35, %v2243_v34  ;;  %v3125_v35 = vld [vmem:[#allocation46_spill] sm:$0xff] }
  0xc7   :  { %v242_v2 = vadd.f32 %v241_v31, %v2232_v59  ;;  %3113 = vst [vmem:[#allocation64_spill] sm:$0xff] %v2236_v46 }
  0xc9   :  { %466 = vmatpush.msra.mxu3 %v242_v2  ;;  %v274_v2 = vadd.f32 %v273_v23, %v2240_v55  ;;  %v137_v23 = vld [vmem:[%s2979_s1 + $0x30] sm:$0xff] }
  0xcb   :  { %467 = vmatpush.msra.mxu3 %v239_v26  ;;  %v306_v26 = vadd.f32 %v305_v60, %v2243_v34  ;;  %v262_v60 = vadd.f32 %v2189_v8, %v2240_v55  ;;  %v132_v8 = vld [vmem:[%s2979_s1 + $0x8] sm:$0xff] }
  0xcd   :  { %v276_v62 = vpop.f32.mrf.mxu2  ;;  %v311_v57 = vpop.f32.mrf.mxu3  ;;  %468 = vmatpush.msra.mxu3 %v236_v22  ;;  %v227_v22 = vadd.f32 %v2161_v19, %v2232_v59  ;;  %v265_v19 = vadd.f32 %v264_v27, %v2240_v55  ;;  %v143_v27 = vld [vmem:[%s2979_s1 + $0x60] sm:$0xff] }
  0xce   :  { %v277_v31 = vadd.f32 %v276_v62, %v2240_v55  ;;  %v312_v46 = vadd.f32 %v311_v57, %v2243_v34  ;;  %v2252_v51 = vpop.f32.mrf.mxu0  ;;  %v268_v57 = vadd.f32 %v267_v11, %v2240_v55  ;;  %v297_v11 = vadd.f32 %v2191_v42, %v2243_v34  ;;  %v138_v42 = vld [vmem:[%s2979_s1 + $0x38] sm:$0xff] }
  0xcf   :  { %469 = vmatpush.msra.mxu3 %v233_v50  ;;  %v3126_v50 = vld [vmem:[#allocation12_spill] sm:$0xff] }
  0xd0   :  { %413 = vmatpush.msra.mxu2 %v277_v31  ;;  %519 = vmatpush.msra.mxu0 %v312_v46  ;;  %v303_v46 = vadd.f32 %v302_v54, %v2243_v34  ;;  %v3128_v31 = vld [vmem:[#allocation47_spill] sm:$0xff] }
  0xd1   :  { %470 = vmatpush.msra.mxu3 %v230_v38  ;;  %v2450_v38 = vld [vmem:[%s2979_s1 + $0xa8] sm:$0xff] }
  0xd2   :  { %414 = vmatpush.msra.mxu2 %v274_v2  ;;  %520 = vmatpush.msra.mxu0 %v309_v39  ;;  %v3127_v39 = vld [vmem:[#allocation31_spill] sm:$0xff]  ;;  %v3131_v2 = vld [vmem:[#allocation32_spill] sm:$0xff] }
  0xd3   :  { %471 = vmatpush.msra.mxu3 %v227_v22  ;;  %v3132_v22 = vld [vmem:[#allocation48_spill] sm:$0xff] }
  0xd4   :  { %415 = vmatpush.msra.mxu2 %v271_v47  ;;  %521 = vmatpush.msra.mxu0 %v306_v26  ;;  %v3130_v26 = vld [vmem:[#allocation14_spill] sm:$0xff]  ;;  %v3133_v47 = vld [vmem:[#allocation16_spill] sm:$0xff] }
  0xd5   :  { %v340_v62 = vpop.f32.mrf.mxu2  ;;  %1371 = vmatmul.msk.f32.vlgmr.msra.gmra.mxu3 %vm384_vm0, %v131_v43  ;;  %v3134_v43 = vld [vmem:[#allocation33_spill] sm:$0xff] }
  0xd6   :  { %416 = vmatpush.msra.mxu2 %v268_v57  ;;  %522 = vmatpush.msra.mxu0 %v303_v46  ;;  %v331_v54 = vpop.f32.mrf.mxu0  ;;  %v3135_v57 = vld [vmem:[#allocation18_spill] sm:$0xff]  ;;  %v3136_v46 = vld [vmem:[#allocation49_spill] sm:$0xff] }
  0xd7   :  { %800 = vmatpush.msrb.mxu3 %v1617_v14 }
  0xd8   :  { %417 = vmatpush.msra.mxu2 %v265_v19  ;;  %523 = vmatpush.msra.mxu0 %v300_v15  ;;  %v2465_v19 = vld [vmem:[%s2977_s2 + $0x378] sm:$0xff]  ;;  %v2470_v15 = vld [vmem:[%s2977_s2 + $0x340] sm:$0xff] }
  0xd9   :  { %801 = vmatpush.msrb.mxu3 %v1629_v16 }
  0xda   :  { %418 = vmatpush.msra.mxu2 %v262_v60  ;;  %524 = vmatpush.msra.mxu0 %v297_v11  ;;  %v3138_v60 = vld [vmem:[#allocation20_spill] sm:$0xff]  ;;  %v3139_v11 = vld [vmem:[#allocation50_spill] sm:$0xff] }
  0xdb   :  { %1365 = vmatmul.msk.f32.vlgmr.msra.gmra.mxu2 %vm384_vm0, %v137_v23  ;;  %1377 = vmatmul.msk.f32.vlgmr.msra.gmra.mxu0 %vm384_vm0, %v143_v27  ;;  %v2479_v23 = vld [vmem:[%s2979_s1 + $0xb0] sm:$0xff]  ;;  %v2484_v27 = vld [vmem:[%s2977_s2 + $0x308] sm:$0xff] }
  0xdc   :  { %835 = vmatpush.msrb.mxu0 %v1544_v0  ;;  %802 = vmatpush.msrb.mxu3 %v1653_v20  ;;  %v133_v0 = vld [vmem:[%s2979_s1 + $0x10] sm:$0xff] }
  0xdd   :  { %v343_v14 = vpop.f32.mrf.mxu2  ;;  %1372 = vmatmul.msk.f32.gmra.mxu3 %vm384_vm0, %v132_v8  ;;  %615 = vmatpush.msrb.mxu2 %v2465_v19  ;;  %v3142_v8 = vld [vmem:[#allocation22_spill] sm:$0xff] }
  0xde   :  { %836 = vmatpush.msrb.mxu0 %v1559_v3  ;;  %803 = vmatpush.msrb.mxu3 %v1677_v24  ;;  %v334_v16 = vpop.f32.mrf.mxu0  ;;  %v2303_v3 = vperm.slane %v2229_v30, 4 }
  0xdf   :  { %616 = vmatpush.msrb.mxu2 %v2470_v15 }
  0xe0   :  { %837 = vmatpush.msrb.mxu0 %v1572_v6  ;;  %804 = vmatpush.msrb.mxu3 %v1701_v28  ;;  %v2315_v28 = vld [vmem:[%s2979_s1 + $0x40] sm:$0xff] }
  0xe1   :  { %617 = vmatpush.msrb.mxu2 %v2484_v27 }
  0xe2   :  { %838 = vmatpush.msrb.mxu0 %v1589_v9  ;;  %805 = vmatpush.msrb.mxu3 %v1725_v32  ;;  %v344_v9 = vadd.f32 %v343_v14, %v2303_v3  ;;  %v3143_v14 = vld [vmem:[#allocation51_spill] sm:$0xff] }
  0xe3   :  { %1366 = vmatmul.msk.f32.gmra.mxu2 %vm384_vm0, %v138_v42  ;;  %1378 = vmatmul.msk.f32.gmra.mxu0 %vm384_vm0, %v144_v58  ;;  %v3145_v42 = vld [vmem:[#allocation25_spill] sm:$0xff]  ;;  %v3146_v58 = vld [vmem:[#allocation52_spill] sm:$0xff] }
  0xe4   :  { %839 = vmatpush.msrb.mxu0 %v1607_v12  ;;  %806 = vmatpush.msrb.mxu3 %v1749_v36  ;;  %v2320_v12 = vld [vmem:[%s2979_s1 + $0x70] sm:$0xff]  ;;  %v2329_v36 = vld [vmem:[%s2979_s1 + $0x18] sm:$0xff] }
  0xe5   :  { %v346_v6 = vpop.f32.mrf.mxu2  ;;  %1373 = vmatmul.msk.f32.gmra.mxu3 %vm384_vm0, %v133_v0  ;;  %v3147_v0 = vld [vmem:[#allocation37_spill] sm:$0xff] }
  0xe6   :  { %v347_v20 = vadd.f32 %v346_v6, %v2303_v3  ;;  %840 = vmatpush.msrb.mxu0 %v1635_v17  ;;  %807 = vmatpush.msrb.mxu3 %v1773_v40  ;;  %v337_v24 = vpop.f32.mrf.mxu0  ;;  %v341_v17 = vadd.f32 %v340_v62, %v2303_v3  ;;  %v149_v40 = vld [vmem:[%s2979_s1 + $0x90] sm:$0xff]  ;;  %v3137_v62 = vld [vmem:[#allocation34_spill] sm:$0xff]  ;;  %v3148_v6 = vld [vmem:[#allocation53_spill] sm:$0xff] }
  0xe7   :  { %v338_v32 = vadd.f32 %v337_v24, %v2303_v3  ;;  %v3149_v24 = vld [vmem:[#allocation38_spill] sm:$0xff] }
  0xe8   :  { %578 = vmatpush.msra.mxu1 %v347_v20  ;;  %841 = vmatpush.msrb.mxu0 %v1659_v21  ;;  %v335_v21 = vadd.f32 %v334_v16, %v2303_v3  ;;  %v3144_v16 = vld [vmem:[#allocation36_spill] sm:$0xff] }
  0xe9   :  { %808 = vmatpush.msrb.mxu3 %v1797_v44  ;;  %v2355_v44 = vld [vmem:[%s2979_s1 + $0x78] sm:$0xff]  ;;  %v2500_v20 = vld [vmem:[%s2977_s2 + $0x2d0] sm:$0xff] }
  0xea   :  { %579 = vmatpush.msra.mxu1 %v344_v9  ;;  %842 = vmatpush.msrb.mxu0 %v1683_v25  ;;  %v332_v25 = vadd.f32 %v331_v54, %v2303_v3  ;;  %v3140_v54 = vld [vmem:[#allocation35_spill] sm:$0xff]  ;;  %v2505_v9 = vld [vmem:[%s2977_s2 + $0x298] sm:$0xff] }
  0xeb   :  { %1367 = vmatmul.msk.f32.gmra.mxu2 %vm384_vm0, %v2315_v28  ;;  %1379 = vmatmul.msk.f32.gmra.mxu0 %vm384_vm0, %v2320_v12 }
  0xec   :  { %580 = vmatpush.msra.mxu1 %v341_v17  ;;  %843 = vmatpush.msrb.mxu0 %v1707_v29  ;;  %v2349_v29 = vld [vmem:[%s2979_s1 + $0x48] sm:$0xff]  ;;  %v3150_v17 = vld [vmem:[#allocation54_spill] sm:$0xff] }
  0xed   :  { %1374 = vmatmul.msk.f32.gmra.mxu3 %vm384_vm0, %v2329_v36  ;;  %618 = vmatpush.msrb.mxu2 %v2500_v20 }
  0xee   :  { %581 = vmatpush.msra.mxu1 %v338_v32  ;;  %809 = vmatpush.msrb.mxu3 %v1821_v48  ;;  %v2418_v48 = vld [vmem:[%s2979_s1 + $0xa0] sm:$0xff]  ;;  %v2513_v32 = vld [vmem:[%s2979_s1 + $0xb8] sm:$0xff] }
  0xef   :  { %844 = vmatpush.msrb.mxu0 %v1731_v33  ;;  %v2361_v33 = vld [vmem:[%s2979_s1 + $0x20] sm:$0xff]  ;;  %619 = vmatpush.msrb.mxu2 %v2505_v9 }
  0xf0   :  { %582 = vmatpush.msra.mxu1 %v335_v21  ;;  %810 = vmatpush.msrb.mxu3 %v1845_v52  ;;  %v3119_v52 = vld [vmem:[#allocation44_spill] sm:$0xff]  ;;  %v2518_v21 = vld [vmem:[%s2977_s2 + $0x260] sm:$0xff] }
  0xf1   :  { %845 = vmatpush.msrb.mxu0 %v1755_v37  ;;  %v2379_v37 = vld [vmem:[%s2979_s1 + $0x98] sm:$0xff]  ;;  %620 = vmatpush.msrb.mxu2 %v2518_v21 }
  0xf2   :  { %583 = vmatpush.msra.mxu1 %v332_v25  ;;  %811 = vmatpush.msrb.mxu3 %v1869_v56  ;;  %v3121_v56 = vld [vmem:[#allocation8_spill] sm:$0xff]  ;;  %v3152_v25 = vld [vmem:[#allocation39_spill] sm:$0xff] }
  0xf3   :  { %1383 = vmatmul.msk.f32.vlgmr.msra.gmra.mxu1 %vm384_vm0, %v149_v40  ;;  %1368 = vmatmul.msk.f32.gmra.mxu2 %vm384_vm0, %v2349_v29  ;;  %v3153_v40 = vld [vmem:[#allocation55_spill] sm:$0xff] }
  0xf4   :  { %1380 = vmatmul.msk.f32.gmra.mxu0 %vm384_vm0, %v2355_v44  ;;  %870 = vmatpush.msrb.mxu1 %v1549_v1  ;;  %v2384_v1 = vld [vmem:[%s2979_s1 + $0x50] sm:$0xff] }
  0xf5   :  { %1375 = vmatmul.msk.f32.gmra.mxu3 %vm384_vm0, %v2361_v33  ;;  %846 = vmatpush.msrb.mxu0 %v1779_v41  ;;  %v2397_v41 = vld [vmem:[%s2979_s1 + $0x28] sm:$0xff] }
  0xf6   :  { %871 = vmatpush.msrb.mxu1 %v1564_v4  ;;  %812 = vmatpush.msrb.mxu3 %v1902_v61  ;;  %v2391_v4 = vld [vmem:[%s2979_s1 + $0x80] sm:$0xff]  ;;  %v3122_v61 = vld [vmem:[#allocation45_spill] sm:$0xff] }
  0xf7   :  { %847 = vmatpush.msrb.mxu0 %v1803_v45  ;;  %v3116_v45 = vld [vmem:[#allocation27_spill] sm:$0xff] }
  0xf8   :  { %872 = vmatpush.msrb.mxu1 %v1577_v7  ;;  %813 = vmatpush.msrb.mxu3 %v1916_v63  ;;  %v3114_v7 = vld [vmem:[#allocation30_spill] sm:$0xff]  ;;  %3141 = vst [vmem:[#allocation27_spill] sm:$0xff] %v2479_v23 }
  0xf9   :  { %848 = vmatpush.msrb.mxu0 %v1827_v49  ;;  %3117 = vst [vmem:[#allocation30_spill] sm:$0xff] %v2418_v48  ;;  %v3118_v49 = vld [vmem:[#allocation6_spill] sm:$0xff] }
  0xfa   :  { %873 = vmatpush.msrb.mxu1 %v1594_v10  ;;  %814 = vmatpush.msrb.mxu3 %v1928_v5  ;;  %v3115_v10 = vld [vmem:[#allocation24_spill] sm:$0xff]  ;;  %v3123_v63 = vld [vmem:[#allocation10_spill] sm:$0xff]  ;;  %v3124_v5 = vld [vmem:[#allocation29_spill] sm:$0xff]  ;;  %3151 = vst [vmem:[#allocation6_spill] sm:$0xff] %v2513_v32 }
  0xfb   :  { %1384 = vmatmul.msk.f32.gmra.mxu1 %vm384_vm0, %v2379_v37  ;;  %1369 = vmatmul.msk.f32.gmra.mxu2 %vm384_vm0, %v2384_v1  ;;  %3129 = vst [vmem:[#allocation24_spill] sm:$0xff] %v2450_v38 }
  0xfc   :  { %1381 = vmatmul.msk.f32.gmra.mxu0 %vm384_vm0, %v2391_v4  ;;  %874 = vmatpush.msrb.mxu1 %v1612_v13  ;;  %v2423_v13 = vld [vmem:[%s2979_s1 + $0x58] sm:$0xff] }
  0xfd   :  { %1376 = vmatmul.msk.f32.gmra.mxu3 %vm384_vm0, %v2397_v41  ;;  %849 = vmatpush.msrb.mxu0 %v1851_v53  ;;  %v3120_v53 = vld [vmem:[#allocation28_spill] sm:$0xff] }
  0xfe   :  { %875 = vmatpush.msrb.mxu1 %v1640_v18  ;;  %815 = vmatpush.msrb.mxu3 %v3114_v7  ;;  %v2430_v18 = vld [vmem:[%s2979_s1 + $0x88] sm:$0xff] }
  0xff   :  { %850 = vmatpush.msrb.mxu0 %v3115_v10  ;;  %v2526_v7 = vld [vmem:[%s2977_s2 + $0x228] sm:$0xff]  ;;  %v3154_v10 = vld [vmem:[#allocation40_spill] sm:$0xff] }
 0x100   :  { %940 = vmatpush.msra.mxu3 %v3116_v45  ;;  %876 = vmatpush.msrb.mxu1 %v3118_v49  ;;  %v3155_v45 = vld [vmem:[#allocation56_spill] sm:$0xff]  ;;  %v3156_v49 = vld [vmem:[#allocation41_spill] sm:$0xff] }
 0x101   :  { %975 = vmatpush.msra.mxu0 %v3119_v52  ;;  %v3157_v52 = vld [vmem:[#allocation57_spill] sm:$0xff]  ;;  %621 = vmatpush.msrb.mxu2 %v2526_v7 }
 0x102   :  { %941 = vmatpush.msra.mxu3 %v3120_v53  ;;  %877 = vmatpush.msrb.mxu1 %v3121_v56  ;;  %v2539_v53 = vld [vmem:[%s2977_s2 + $0x1f0] sm:$0xff]  ;;  %v2544_v56 = vld [vmem:[%s2977_s2 + $0x1b8] sm:$0xff] }
 0x103   :  { %976 = vmatpush.msra.mxu0 %v3122_v61  ;;  %1385 = vmatmul.msk.f32.gmra.mxu1 %vm384_vm0, %v2418_v48  ;;  %v3158_v61 = vld [vmem:[#allocation42_spill] sm:$0xff] }
 0x104   :  { %1370 = vmatmul.msk.f32.gmra.mxu2 %vm384_vm0, %v2423_v13  ;;  %1382 = vmatmul.msk.f32.gmra.mxu0 %vm384_vm0, %v2430_v18 }
 0x105   :  { %878 = vmatpush.msrb.mxu1 %v3123_v63  ;;  %942 = vmatpush.msra.mxu3 %v3124_v5  ;;  %v3159_v63 = vld [vmem:[#allocation58_spill] sm:$0xff] }
 0x106   :  { %977 = vmatpush.msra.mxu0 %v3125_v35  ;;  %622 = vmatpush.msrb.mxu2 %v2539_v53  ;;  %v2552_v5 = vld [vmem:[%s2977_s2 + $0x180] sm:$0xff]  ;;  %v3160_v35 = vld [vmem:[#allocation43_spill] sm:$0xff] }
 0x107   :  { %879 = vmatpush.msrb.mxu1 %v3126_v50  ;;  %943 = vmatpush.msra.mxu3 %v3127_v39  ;;  %v3161_v50 = vld [vmem:[#allocation59_spill] sm:$0xff] }
 0x108   :  { %978 = vmatpush.msra.mxu0 %v3128_v31  ;;  %623 = vmatpush.msrb.mxu2 %v2544_v56  ;;  %v2560_v39 = vld [vmem:[%s2977_s2 + $0x148] sm:$0xff]  ;;  %v2564_v31 = vpop.f32.mrf.mxu3 }
 0x109   :  { %880 = vmatpush.msrb.mxu1 %v3130_v26  ;;  %944 = vmatpush.msra.mxu3 %v3131_v2  ;;  %v2569_v26 = vld [vmem:[%s2977_s2 + $0x110] sm:$0xff]  ;;  %v2575_v2 = vld [vmem:[%s2977_s2 + $0xd8] sm:$0xff] }
 0x10a   :  { %979 = vmatpush.msra.mxu0 %v3132_v22  ;;  %624 = vmatpush.msrb.mxu2 %v2552_v5 }
 0x10b   :  { %881 = vmatpush.msrb.mxu1 %v3133_v47  ;;  %945 = vmatpush.msra.mxu3 %v3134_v43  ;;  %v2583_v47 = vld [vmem:[%s2977_s2 + $0xa0] sm:$0xff] }
 0x10c   :  { %1386 = vmatmul.msk.f32.gmra.mxu1 %vm384_vm0, %v2450_v38  ;;  %980 = vmatpush.msra.mxu0 %v3136_v46  ;;  %v2593_v46 = vpop.f32.mrf.mxu1 }
 0x10d   :  { %882 = vmatpush.msrb.mxu1 %v3135_v57  ;;  %946 = vmatpush.msra.mxu3 %v3137_v62  ;;  %v2591_v57 = vld [vmem:[%s2977_s2 + $0x68] sm:$0xff]  ;;  %v2599_v62 = vld [vmem:[%s2977_s2 + $0x30] sm:$0xff] }
 0x10e   :  { %981 = vmatpush.msra.mxu0 %v3139_v11  ;;  %625 = vmatpush.msrb.mxu2 %v2560_v39  ;;  %v1506_v11 = vld [vmem:[%s2977_s2 + $0x328] sm:$0xff] }
 0x10f   :  { %883 = vmatpush.msrb.mxu1 %v3138_v60  ;;  %947 = vmatpush.msra.mxu3 %v3140_v54  ;;  %v1505_v60 = vld [vmem:[%s2977_s2 + $0x360] sm:$0xff] }
 0x110   :  { %982 = vmatpush.msra.mxu0 %v3143_v14  ;;  %626 = vmatpush.msrb.mxu2 %v2569_v26  ;;  %v2578_v22 = vpop.f32.mrf.mxu3  ;;  %v3162_v54 = vld [vmem:[#allocation2_spill] sm:$0xff]  ;;  %v3163_v14 = vld [vmem:[#allocation3_spill] sm:$0xff] }
 0x111   :  { %884 = vmatpush.msrb.mxu1 %v3142_v8  ;;  %948 = vmatpush.msra.mxu3 %v3144_v16 }
 0x112   :  { %983 = vmatpush.msra.mxu0 %v3146_v58  ;;  %627 = vmatpush.msrb.mxu2 %v2575_v2 }
 0x113   :  { %885 = vmatpush.msrb.mxu1 %v3145_v42  ;;  %949 = vmatpush.msra.mxu3 %v3147_v0  ;;  %v3164_v42 = vld [vmem:[#allocation4_spill] sm:$0xff]  ;;  %v3165_v0 = vld [vmem:[#allocation5_spill] sm:$0xff] }
 0x114   :  { %1387 = vmatmul.msk.f32.gmra.mxu1 %vm384_vm0, %v2479_v23  ;;  %984 = vmatpush.msra.mxu0 %v3148_v6  ;;  %v2610_v16 = vpop.f32.mrf.mxu1 }
 0x115   :  { %950 = vmatpush.msra.mxu3 %v3149_v24  ;;  %628 = vmatpush.msrb.mxu2 %v2583_v47  ;;  %v3166_v24 = vld [vmem:[#allocation7_spill] sm:$0xff] }
 0x116   :  { %985 = vmatpush.msra.mxu0 %v3150_v17  ;;  %v3167_v17 = vld [vmem:[#allocation9_spill] sm:$0xff] }
 0x117   :  { %951 = vmatpush.msra.mxu3 %v3152_v25  ;;  %629 = vmatpush.msrb.mxu2 %v2591_v57 }
 0x118   :  { %986 = vmatpush.msra.mxu0 %v3153_v40  ;;  %v2586_v43 = vpop.f32.mrf.mxu3  ;;  %v3168_v40 = vld [vmem:[#allocation11_spill] sm:$0xff] }
 0x119   :  { %952 = vmatpush.msra.mxu3 %v3154_v10  ;;  %630 = vmatpush.msrb.mxu2 %v2599_v62 }
 0x11a   :  { %987 = vmatpush.msra.mxu0 %v3155_v45 }
 0x11b   :  { %953 = vmatpush.msra.mxu3 %v3156_v49  ;;  %905 = vmatpush.msra.mxu2 %v1505_v60  ;;  %v3169_v49 = vld [vmem:[#allocation13_spill] sm:$0xff] }
 0x11c   :  { %1388 = vmatmul.msk.f32.gmra.mxu1 %vm384_vm0, %v2513_v32  ;;  %988 = vmatpush.msra.mxu0 %v3157_v52  ;;  %v2617_v10 = vpop.f32.mrf.mxu1 }
 0x11d   :  { %954 = vmatpush.msra.mxu3 %v3158_v61  ;;  %906 = vmatpush.msra.mxu2 %v1506_v11  ;;  %v3170_v61 = vld [vmem:[#allocation15_spill] sm:$0xff] }
 0x11e   :  { %989 = vmatpush.msra.mxu0 %v3159_v63  ;;  %v3172_v11 = vld [vmem:[#allocation19_spill] sm:$0xff] }
 0x11f   :  { %955 = vmatpush.msra.mxu3 %v3160_v35  ;;  %907 = vmatpush.msra.mxu2 %v3162_v54  ;;  %v3171_v35 = vld [vmem:[#allocation17_spill] sm:$0xff] }
 0x120   :  { %990 = vmatpush.msra.mxu0 %v3161_v50  ;;  %v2623_v50 = vperm.slane %v2229_v30, 0 }
 0x121   :  { %908 = vmatpush.msra.mxu2 %v3163_v14  ;;  %v3173_v14 = vld [vmem:[#allocation21_spill] sm:$0xff] }
 0x123   :  { %909 = vmatpush.msra.mxu2 %v3164_v42 }
 0x125   :  { %910 = vmatpush.msra.mxu2 %v3165_v0 }
 0x127   :  { %911 = vmatpush.msra.mxu2 %v3166_v24  ;;  %v3174_v24 = vld [vmem:[#allocation60_spill] sm:$0xff] }
 0x129   :  { %912 = vmatpush.msra.mxu2 %v3167_v17  ;;  %v192_v17 = vadd.f32 %v3174_v24, %v2623_v50 }
 0x12b   :  { %913 = vmatpush.msra.mxu2 %v3168_v40  ;;  %v3175_v40 = vld [vmem:[#allocation23_spill] sm:$0xff] }
 0x12d   :  { %914 = vmatpush.msra.mxu2 %v3169_v49 }
 0x12f   :  { %915 = vmatpush.msra.mxu2 %v3170_v61  ;;  %v3176_v61 = vld [vmem:[#allocation26_spill] sm:$0xff] }
 0x131   :  { %916 = vmatpush.msra.mxu2 %v3171_v35 }
 0x133   :  { %917 = vmatpush.msra.mxu2 %v3172_v11  ;;  %v3177_v11 = vld [vmem:[#allocation61_spill] sm:$0xff] }
 0x135   :  { %918 = vmatpush.msra.mxu2 %v3173_v14  ;;  %v195_v14 = vadd.f32 %v3177_v11, %v2623_v50 }
 0x137   :  { %919 = vmatpush.msra.mxu2 %v3175_v40 }
 0x139   :  { %920 = vmatpush.msra.mxu2 %v3176_v61 }
 0x158   :  { %v473_v8 = vpop.f32.mrf.mxu3  ;;  %v526_v6 = vpop.f32.mrf.mxu0 }
 0x15e   :  { %v420_v58 = vpop.f32.mrf.mxu2 }
 0x15f   :  { %v474_v52 = vadd.f32 %v473_v8, %v420_v58 }
 0x160   :  { %v476_v25 = vpop.f32.mrf.mxu3  ;;  %v529_v63 = vpop.f32.mrf.mxu0 }
 0x161   :  { %v544_v60 = vadd.f32 %v526_v6, %v474_v52 }
 0x166   :  { %v423_v45 = vpop.f32.mrf.mxu2 }
 0x167   :  { %v477_v58 = vadd.f32 %v476_v25, %v423_v45 }
 0x168   :  { %v479_v54 = vpop.f32.mrf.mxu3  ;;  %v532_v35 = vpop.f32.mrf.mxu0 }
 0x169   :  { %v545_v6 = vadd.f32 %v529_v63, %v477_v58 }
 0x16e   :  { %v426_v0 = vpop.f32.mrf.mxu2 }
 0x16f   :  { %v480_v23 = vadd.f32 %v479_v54, %v426_v0 }
 0x170   :  { %v585_v42 = vpop.f32.mrf.mxu1  ;;  %v482_v24 = vpop.f32.mrf.mxu3 }
 0x171   :  { %v603_v8 = vadd.f32 %v585_v42, %v544_v60  ;;  %v546_v25 = vadd.f32 %v532_v35, %v480_v23  ;;  %v535_v45 = vpop.f32.mrf.mxu0 }
 0x173   :  { %v2630_v49 = vadd.f32 %v603_v8, %v192_v17  ;;  %v3178_v17 = vld [vmem:[#allocation62_spill] sm:$0xff] }
 0x174   :  { %v198_v8 = vadd.f32 %v3178_v17, %v2623_v50  ;;  %v3180_v17 = vld [vmem:[#allocation64_spill] sm:$0xff] }
 0x175   :  { %631 = vmatmul.f32.vlgmr.msrb.gmra.mxu2 %v2630_v49 }
 0x176   :  { %v429_v38 = vpop.f32.mrf.mxu2 }
 0x177   :  { %v483_v63 = vadd.f32 %v482_v24, %v429_v38 }
 0x178   :  { %v588_v52 = vpop.f32.mrf.mxu1  ;;  %v485_v11 = vpop.f32.mrf.mxu3 }
 0x179   :  { %v604_v32 = vadd.f32 %v588_v52, %v545_v6  ;;  %v547_v54 = vadd.f32 %v535_v45, %v483_v63  ;;  %v3179_v6 = vld [vmem:[#allocation63_spill] sm:$0xff] }
 0x17a   :  { %v201_v52 = vadd.f32 %v3179_v6, %v2623_v50  ;;  %v2660_v6 = vperm.slane %v2229_v30, 5 }
 0x17b   :  { %v2636_v60 = vadd.f32 %v604_v32, %v195_v14  ;;  %v538_v32 = vpop.f32.mrf.mxu0 }
 0x17d   :  { %634 = vmatmul.f32.gmra.mxu2 %v2636_v60 }
 0x17e   :  { %v432_v61 = vpop.f32.mrf.mxu2 }
 0x17f   :  { %v486_v35 = vadd.f32 %v485_v11, %v432_v61  ;;  %v207_v11 = vadd.f32 %v2252_v51, %v2623_v50 }
 0x180   :  { %v591_v42 = vpop.f32.mrf.mxu1  ;;  %v488_v24 = vpop.f32.mrf.mxu3 }
 0x181   :  { %v605_v40 = vadd.f32 %v591_v42, %v546_v25  ;;  %v548_v25 = vadd.f32 %v538_v32, %v486_v35 }
 0x183   :  { %v2641_v58 = vadd.f32 %v605_v40, %v198_v8  ;;  %v204_v8 = vadd.f32 %v3180_v17, %v2623_v50  ;;  %v541_v63 = vpop.f32.mrf.mxu0 }
 0x185   :  { %637 = vmatmul.f32.gmra.mxu2 %v2641_v58 }
 0x187   :  { %v435_v38 = vpop.f32.mrf.mxu2 }
 0x188   :  { %v489_v45 = vadd.f32 %v488_v24, %v435_v38  ;;  %v370_v24 = vadd.f32 %v2610_v16, %v2660_v6 }
 0x189   :  { %v594_v0 = vpop.f32.mrf.mxu1 }
 0x18a   :  { %v606_v23 = vadd.f32 %v594_v0, %v547_v54  ;;  %v549_v54 = vadd.f32 %v541_v63, %v489_v45  ;;  %v373_v45 = vadd.f32 %v2617_v10, %v2660_v6 }
 0x18c   :  { %v2646_v14 = vadd.f32 %v606_v23, %v201_v52  ;;  %v367_v52 = vadd.f32 %v2593_v46, %v2660_v6  ;;  %v2667_v23 = vld [vmem:[%s2977_s2 + $0x3b0] ss:$0 sm:$0xff] }
 0x18d   :  { %3181 = vst [vmem:[#allocation44_spill] sm:$0xff] %v2667_v23 }
 0x18e   :  { %640 = vmatmul.f32.gmra.mxu2 %v2646_v14 }
 0x191   :  { %v597_v42 = vpop.f32.mrf.mxu1 }
 0x192   :  { %v607_v40 = vadd.f32 %v597_v42, %v548_v25 }
 0x194   :  { %v2651_v48 = vadd.f32 %v607_v40, %v204_v8 }
 0x196   :  { %643 = vmatmul.f32.gmra.mxu2 %v2651_v48 }
 0x199   :  { %v600_v61 = vpop.f32.mrf.mxu1 }
 0x19a   :  { %v608_v0 = vadd.f32 %v600_v61, %v549_v54 }
 0x19c   :  { %v2656_v32 = vadd.f32 %v608_v0, %v207_v11 }
 0x19e   :  { %646 = vmatmul.f32.gmra.mxu2 %v2656_v32 }
 0x1f8   :  { %v632_v35 = vpop.f32.mrf.mxu2 }
 0x1f9   :  { %v633_v25 = vadd.f32 %v632_v35, %v367_v52  ;;  %v376_v35 = vadd.f32 %v2564_v31, %v2660_v6 }
 0x1fb   :  { %v650_v51 = vadd.f32 %v633_v25, %v2667_v23 }
 0x1fd   :  { %v1389_v38 = vmul.f32 -1.442695, %v650_v51 }
 0x1ff   :  { %1457 = vpow2.f32 %v1389_v38 }
 0x200   :  { %v635_v42 = vpop.f32.mrf.mxu2 }
 0x201   :  { %v636_v30 = vadd.f32 %v635_v42, %v370_v24 }
 0x203   :  { %v651_v17 = vadd.f32 %v636_v30, %v2667_v23 }
 0x205   :  { %v1458_v8 = vpop.eup %1457  ;;  %v1390_v46 = vmul.f32 -1.442695, %v651_v17 }
 0x206   :  { %v674_v40 = vadd.f32 1.0, %v1458_v8 }
 0x207   :  { %1459 = vpow2.f32 %v1390_v46 }
 0x208   :  { %1461 = vrcp.f32 %v674_v40  ;;  %v638_v63 = vpop.f32.mrf.mxu2  ;;  %v691_v10 = vand.u32 2147483648, %v674_v40  ;;  %v689_v30 = vand.u32 2147483647, %v674_v40  ;;  %vm685_vm2 = vweird.f32 %v674_v40 }
 0x209   :  { %v639_v54 = vadd.f32 %v638_v63, %v373_v45 }
 0x20a   :  { %vm690_vm4 = vcmp.eq.f32.partialorder %v689_v30, 8.507059e+37 }
 0x20b   :  { %v652_v61 = vadd.f32 %v639_v54, %v2667_v23  ;;  %v692_v54 = vor.u32 1.1754944e-38, %v691_v10 }
 0x20d   :  { %v1460_v11 = vpop.eup %1459  ;;  %v1391_v0 = vmul.f32 -1.442695, %v652_v61 }
 0x20e   :  { %v1462_v16 = vpop.eup %1461  ;;  %v675_v52 = vadd.f32 1.0, %v1460_v11 }
 0x20f   :  { %v681_v25 = vmul.f32 %v1462_v16, %v674_v40  ;;  %1463 = vpow2.f32 %v1391_v0  ;;  %vm686_vm1 = vweird.f32 %v1462_v16  ;;  %v379_v0 = vadd.f32 %v2578_v22, %v2660_v6 }
 0x210   :  { %1465 = vrcp.f32 %v675_v52  ;;  %vm687_vm3 = vmor %vm685_vm2, %vm686_vm1  ;;  %vm700_vm6 = vweird.f32 %v675_v52 }
 0x211   :  { %v641_v51 = vpop.f32.mrf.mxu2  ;;  %v682_v38 = vsub.f32 1.0, %v681_v25 }
 0x212   :  { %v642_v24 = vadd.f32 %v641_v51, %v376_v35  ;;  %v770_v51 = vmax.f32 %v2630_v49, 0.0 }
 0x213   :  { %v683_v42 = vmul.f32 %v1462_v16, %v682_v38 }
 0x214   :  { %v653_v17 = vadd.f32 %v642_v24, %v2667_v23  ;;  %v704_v24 = vand.u32 2147483647, %v675_v52 }
 0x215   :  { %v1464_v8 = vpop.eup %1463  ;;  %v684_v46 = vadd.f32 %v1462_v16, %v683_v42  ;;  %v706_v42 = vand.u32 2147483648, %v675_v52 }
 0x216   :  { %v1392_v45 = vmul.f32 -1.442695, %v653_v17  ;;  %v1466_v63 = vpop.eup %1465  ;;  %v2679_v31 = vadd.f32 1.0, %v1464_v8  ;;  %vm705_vm8 = vcmp.eq.f32.partialorder %v704_v24, 8.507059e+37 }
 0x217   :  { %v688_v61 = vsel %vm687_vm3, %v1462_v16, %v684_v46  ;;  %v696_v11 = vmul.f32 %v1466_v63, %v675_v52  ;;  %v1507_v16 = vld [vmem:[%s2978_s0] sm:$0xff]  ;;  %vm701_vm5 = vweird.f32 %v1466_v63 }
 0x218   :  { %1467 = vpow2.f32 %v1392_v45  ;;  %v693_v35 = vsel %vm690_vm4, %v692_v54, %v688_v61  ;;  %vm702_vm7 = vmor %vm700_vm6, %vm701_vm5  ;;  %v707_v61 = vor.u32 1.1754944e-38, %v706_v42  ;;  %v719_v42 = vand.u32 2147483647, %v2679_v31 }
 0x219   :  { %1469 = vrcp.f32 %v2679_v31  ;;  %v644_v25 = vpop.f32.mrf.mxu2  ;;  %v782_v40 = vsub.f32 1.0, %v693_v35  ;;  %v697_v38 = vsub.f32 1.0, %v696_v11  ;;  %v776_v17 = vmul.f32 %v770_v51, %v693_v35 }
 0x21a   :  { %v645_v10 = vadd.f32 %v644_v25, %v379_v0  ;;  %v382_v51 = vadd.f32 %v2586_v43, %v2660_v6  ;;  %v1508_v43 = vld [vmem:[%s2978_s0 + $0x8] sm:$0xff]  ;;  %vm715_vm10 = vweird.f32 %v2679_v31  ;;  %vm720_vm12 = vcmp.eq.f32.partialorder %v719_v42, 8.507059e+37 }
 0x21b   :  { %v788_v30 = vmul.f32 %v1507_v16, %v782_v40  ;;  %v698_v8 = vmul.f32 %v1466_v63, %v697_v38 }
 0x21c   :  { %v654_v22 = vadd.f32 %v645_v10, %v2667_v23  ;;  %v721_v10 = vand.u32 2147483648, %v2679_v31 }
 0x21d   :  { %v2689_v45 = vadd.f32 %v788_v30, %v776_v17  ;;  %v699_v54 = vadd.f32 %v1466_v63, %v698_v8 }
 0x21e   :  { %v1468_v46 = vpop.eup %1467  ;;  %v1393_v0 = vmul.f32 -1.442695, %v654_v22 }
 0x21f   :  { %3182 = vst [vmem:[#allocation28_spill] sm:$0xff] %v2689_v45  ;;  %v1470_v49 = vpop.eup %1469  ;;  %v2691_v11 = vadd.f32 1.0, %v1468_v46  ;;  %v703_v35 = vsel %vm702_vm7, %v1466_v63, %v699_v54  ;;  %816 = vmatmul.f32.vlgmr.msrb.gmra.mxu3 %v2689_v45  ;;  %851 = vmatmul.f32.vlgmr.msrb.gmra.mxu0 %v2689_v45  ;;  %v771_v63 = vmax.f32 %v2636_v60, 0.0 }
 0x220   :  { %v711_v25 = vmul.f32 %v1470_v49, %v2679_v31  ;;  %v708_v40 = vsel %vm705_vm8, %v707_v61, %v703_v35  ;;  %886 = vmatmul.f32.vlgmr.msrb.gmra.mxu1 %v2689_v45  ;;  %921 = vmatmul.f32.vlgmr.msra.gmra.mxu2 %v2689_v45  ;;  %vm716_vm9 = vweird.f32 %v1470_v49  ;;  %v722_v61 = vor.u32 1.1754944e-38, %v721_v10  ;;  %v1509_v10 = vld [vmem:[%s2978_s0 + $0x10] sm:$0xff] }
 0x221   :  { %1471 = vrcp.f32 %v2691_v11  ;;  %v647_v52 = vpop.f32.mrf.mxu2  ;;  %v783_v38 = vsub.f32 1.0, %v708_v40  ;;  %v777_v16 = vmul.f32 %v771_v63, %v708_v40  ;;  %vm717_vm11 = vmor %vm715_vm10, %vm716_vm9  ;;  %v772_v31 = vmax.f32 %v2641_v58, 0.0 }
 0x222   :  { %v712_v24 = vsub.f32 1.0, %v711_v25  ;;  %1473 = vpow2.f32 %v1393_v0  ;;  %v648_v17 = vadd.f32 %v647_v52, %v382_v51  ;;  %vm730_vm14 = vweird.f32 %v2691_v11 }
 0x223   :  { %v789_v30 = vmul.f32 %v1508_v43, %v783_v38 }
 0x224   :  { %v713_v8 = vmul.f32 %v1470_v49, %v712_v24  ;;  %v655_v22 = vadd.f32 %v648_v17, %v2667_v23  ;;  %v736_v24 = vand.u32 2147483648, %v2691_v11 }
 0x225   :  { %v2708_v46 = vadd.f32 %v789_v30, %v777_v16 }
 0x226   :  { %v714_v60 = vadd.f32 %v1470_v49, %v713_v8  ;;  %v1394_v0 = vmul.f32 -1.442695, %v655_v22  ;;  %v737_v8 = vor.u32 1.1754944e-38, %v736_v24 }
 0x227   :  { %3183 = vst [vmem:[#allocation8_spill] sm:$0xff] %v2708_v46  ;;  %v1472_v54 = vpop.eup %1471  ;;  %819 = vmatmul.f32.gmra.mxu3 %v2708_v46  ;;  %854 = vmatmul.f32.gmra.mxu0 %v2708_v46 }
 0x228   :  { %v718_v35 = vsel %vm717_vm11, %v1470_v49, %v714_v60  ;;  %v726_v25 = vmul.f32 %v1472_v54, %v2691_v11  ;;  %v1474_v51 = vpop.eup %1473  ;;  %1475 = vpow2.f32 %v1394_v0  ;;  %889 = vmatmul.f32.gmra.mxu1 %v2708_v46  ;;  %924 = vmatmul.f32.gmra.mxu2 %v2708_v46  ;;  %vm731_vm13 = vweird.f32 %v1472_v54 }
 0x229   :  { %v723_v40 = vsel %vm720_vm12, %v722_v61, %v718_v35  ;;  %v678_v38 = vadd.f32 1.0, %v1474_v51  ;;  %v734_v49 = vand.u32 2147483647, %v2691_v11  ;;  %vm732_vm15 = vmor %vm730_vm14, %vm731_vm13  ;;  %v773_v35 = vmax.f32 %v2646_v14, 0.0 }
 0x22a   :  { %v784_v52 = vsub.f32 1.0, %v723_v40  ;;  %v727_v63 = vsub.f32 1.0, %v726_v25  ;;  %v778_v42 = vmul.f32 %v772_v31, %v723_v40 }
 0x22b   :  { %1477 = vrcp.f32 %v678_v38  ;;  %vm735_vm1 = vcmp.eq.f32.partialorder %v734_v49, 8.507059e+37  ;;  %v749_v24 = vand.u32 2147483647, %v678_v38  ;;  %vm745_vm3 = vweird.f32 %v678_v38 }
 0x22c   :  { %v790_v17 = vmul.f32 %v1509_v10, %v784_v52  ;;  %v728_v16 = vmul.f32 %v1472_v54, %v727_v63  ;;  %v751_v63 = vand.u32 2147483648, %v678_v38 }
 0x22d   :  { %vm750_vm5 = vcmp.eq.f32.partialorder %v749_v24, 8.507059e+37 }
 0x22e   :  { %v2722_v43 = vadd.f32 %v790_v17, %v778_v42  ;;  %v729_v30 = vadd.f32 %v1472_v54, %v728_v16  ;;  %v1476_v58 = vpop.eup %1475  ;;  %v752_v17 = vor.u32 1.1754944e-38, %v751_v63  ;;  %v775_v63 = vmax.f32 %v2656_v32, 0.0 }
 0x22f   :  { %v679_v60 = vadd.f32 1.0, %v1476_v58  ;;  %v774_v58 = vmax.f32 %v2651_v48, 0.0 }
 0x230   :  { %3184 = vst [vmem:[#allocation45_spill] sm:$0xff] %v2722_v43  ;;  %v733_v22 = vsel %vm732_vm15, %v1472_v54, %v729_v30  ;;  %822 = vmatmul.f32.gmra.mxu3 %v2722_v43  ;;  %857 = vmatmul.f32.gmra.mxu0 %v2722_v43  ;;  %v1510_v54 = vld [vmem:[%s2978_s0 + $0x18] sm:$0xff] }
 0x231   :  { %v738_v61 = vsel %vm735_vm1, %v737_v8, %v733_v22  ;;  %892 = vmatmul.f32.gmra.mxu1 %v2722_v43  ;;  %927 = vmatmul.f32.gmra.mxu2 %v2722_v43  ;;  %v1478_v0 = vpop.eup %1477  ;;  %1479 = vrcp.f32 %v679_v60  ;;  %v766_v22 = vand.u32 2147483648, %v679_v60  ;;  %vm760_vm7 = vweird.f32 %v679_v60 }
 0x232   :  { %v785_v25 = vsub.f32 1.0, %v738_v61  ;;  %v741_v11 = vmul.f32 %v1478_v0, %v678_v38  ;;  %v779_v51 = vmul.f32 %v773_v35, %v738_v61  ;;  %vm746_vm2 = vweird.f32 %v1478_v0  ;;  %v1511_v38 = vld [vmem:[%s2978_s0 + $0x20] sm:$0xff] }
 0x233   :  { %vm747_vm4 = vmor %vm745_vm3, %vm746_vm2 }
 0x234   :  { %v791_v40 = vmul.f32 %v1510_v54, %v785_v25  ;;  %v742_v31 = vsub.f32 1.0, %v741_v11  ;;  %v764_v25 = vand.u32 2147483647, %v679_v60 }
 0x236   :  { %v2733_v52 = vadd.f32 %v791_v40, %v779_v51  ;;  %v743_v49 = vmul.f32 %v1478_v0, %v742_v31  ;;  %vm765_vm9 = vcmp.eq.f32.partialorder %v764_v25, 8.507059e+37 }
 0x237   :  { %v1480_v42 = vpop.eup %1479 }
 0x238   :  { %3185 = vst [vmem:[#allocation10_spill] sm:$0xff] %v2733_v52  ;;  %825 = vmatmul.f32.gmra.mxu3 %v2733_v52  ;;  %860 = vmatmul.f32.gmra.mxu0 %v2733_v52  ;;  %v744_v14 = vadd.f32 %v1478_v0, %v743_v49  ;;  %v756_v10 = vmul.f32 %v1480_v42, %v679_v60  ;;  %vm761_vm6 = vweird.f32 %v1480_v42  ;;  %v1512_v60 = vld [vmem:[%s2978_s0 + $0x28] sm:$0xff] }
 0x239   :  { %895 = vmatmul.f32.gmra.mxu1 %v2733_v52  ;;  %930 = vmatmul.f32.gmra.mxu2 %v2733_v52  ;;  %vm762_vm8 = vmor %vm760_vm7, %vm761_vm6 }
 0x23a   :  { %v748_v16 = vsel %vm747_vm4, %v1478_v0, %v744_v14  ;;  %v757_v30 = vsub.f32 1.0, %v756_v10  ;;  %v767_v0 = vor.u32 1.1754944e-38, %v766_v22 }
 0x23b   :  { %v753_v8 = vsel %vm750_vm5, %v752_v17, %v748_v16 }
 0x23c   :  { %v786_v61 = vsub.f32 1.0, %v753_v8  ;;  %v758_v35 = vmul.f32 %v1480_v42, %v757_v30  ;;  %v780_v11 = vmul.f32 %v774_v58, %v753_v8 }
 0x23e   :  { %v792_v51 = vmul.f32 %v1511_v38, %v786_v61  ;;  %v759_v54 = vadd.f32 %v1480_v42, %v758_v35 }
 0x240   :  { %v2743_v40 = vadd.f32 %v792_v51, %v780_v11  ;;  %v763_v31 = vsel %vm762_vm8, %v1480_v42, %v759_v54 }
 0x241   :  { %v768_v48 = vsel %vm765_vm9, %v767_v0, %v763_v31 }
 0x242   :  { %3186 = vst [vmem:[#allocation29_spill] sm:$0xff] %v2743_v40  ;;  %v787_v49 = vsub.f32 1.0, %v768_v48  ;;  %828 = vmatmul.f32.gmra.mxu3 %v2743_v40  ;;  %863 = vmatmul.f32.gmra.mxu0 %v2743_v40  ;;  %v781_v24 = vmul.f32 %v775_v63, %v768_v48 }
 0x243   :  { %898 = vmatmul.f32.gmra.mxu1 %v2743_v40  ;;  %933 = vmatmul.f32.gmra.mxu2 %v2743_v40 }
 0x244   :  { %v793_v14 = vmul.f32 %v1512_v60, %v787_v49 }
 0x246   :  { %v2753_v42 = vadd.f32 %v793_v14, %v781_v24 }
 0x248   :  { %3187 = vst [vmem:[#allocation46_spill] sm:$0xff] %v2753_v42 }
 0x24a   :  { %831 = vmatmul.f32.gmra.mxu3 %v2753_v42  ;;  %866 = vmatmul.f32.gmra.mxu0 %v2753_v42 }
 0x24b   :  { %901 = vmatmul.f32.gmra.mxu1 %v2753_v42  ;;  %936 = vmatmul.f32.gmra.mxu2 %v2753_v42 }
 0x252   :  { %956 = vmatmul.f32.vlgmr.msra.gmra.mxu3 %v2689_v45  ;;  %991 = vmatmul.f32.vlgmr.msra.gmra.mxu0 %v2689_v45 }
 0x25a   :  { %959 = vmatmul.f32.gmra.mxu3 %v2708_v46  ;;  %994 = vmatmul.f32.gmra.mxu0 %v2708_v46 }
 0x262   :  { %962 = vmatmul.f32.gmra.mxu3 %v2722_v43  ;;  %997 = vmatmul.f32.gmra.mxu0 %v2722_v43 }
 0x26a   :  { %965 = vmatmul.f32.gmra.mxu3 %v2733_v52  ;;  %1000 = vmatmul.f32.gmra.mxu0 %v2733_v52 }
 0x272   :  { %968 = vmatmul.f32.gmra.mxu3 %v2743_v40  ;;  %1003 = vmatmul.f32.gmra.mxu0 %v2743_v40 }
 0x27a   :  { %971 = vmatmul.f32.gmra.mxu3 %v2753_v42  ;;  %1006 = vmatmul.f32.gmra.mxu0 %v2753_v42 }
 0x29c   :  { %v852_v32 = vpop.f32.mrf.mxu0 }
 0x29d   :  { %v887_v10 = vpop.f32.mrf.mxu1 }
 0x2a2   :  { %v2771_v17 = vpop.f32.mrf.mxu3 }
 0x2a3   :  { %v922_v16 = vpop.f32.mrf.mxu2 }
 0x2a4   :  { %v855_v30 = vpop.f32.mrf.mxu0 }
 0x2a5   :  { %v890_v58 = vpop.f32.mrf.mxu1 }
 0x2aa   :  { %v2773_v8 = vpop.f32.mrf.mxu3 }
 0x2ab   :  { %v925_v22 = vpop.f32.mrf.mxu2 }
 0x2ad   :  { %v858_v61 = vpop.f32.mrf.mxu0 }
 0x2ae   :  { %v893_v35 = vpop.f32.mrf.mxu1  ;;  %v859_v23 = vadd.f32 %v858_v61, %v2232_v59  ;;  %v888_v61 = vadd.f32 %v887_v10, %v2240_v55  ;;  %v1515_v10 = vld [vmem:[%s2979_s1 + $0x60] sm:$0xff] }
 0x2b3   :  { %v2775_v25 = vpop.f32.mrf.mxu3 }
 0x2b4   :  { %v928_v11 = vpop.f32.mrf.mxu2 }
 0x2b5   :  { %v861_v38 = vpop.f32.mrf.mxu0 }
 0x2b6   :  { %v896_v51 = vpop.f32.mrf.mxu1  ;;  %v862_v43 = vadd.f32 %v861_v38, %v2232_v59 }
 0x2b7   :  { %v897_v46 = vadd.f32 %v896_v51, %v2240_v55 }
 0x2bb   :  { %v2777_v54 = vpop.f32.mrf.mxu3 }
 0x2bc   :  { %v931_v0 = vpop.f32.mrf.mxu2 }
 0x2bf   :  { %v864_v31 = vpop.f32.mrf.mxu0 }
 0x2c0   :  { %v899_v48 = vpop.f32.mrf.mxu1  ;;  %v865_v40 = vadd.f32 %v864_v31, %v2232_v59 }
 0x2c1   :  { %v900_v52 = vadd.f32 %v899_v48, %v2240_v55  ;;  %v856_v48 = vadd.f32 %v855_v30, %v2232_v59  ;;  %v1513_v30 = vld [vmem:[%s2979_s1] sm:$0xff] }
 0x2c5   :  { %v2779_v63 = vpop.f32.mrf.mxu3 }
 0x2c6   :  { %v934_v49 = vpop.f32.mrf.mxu2 }
 0x2c7   :  { %v867_v24 = vpop.f32.mrf.mxu0 }
 0x2c8   :  { %v868_v60 = vadd.f32 %v867_v24, %v2232_v59  ;;  %v902_v14 = vpop.f32.mrf.mxu1 }
 0x2c9   :  { %v903_v42 = vadd.f32 %v902_v14, %v2240_v55  ;;  %v894_v14 = vadd.f32 %v893_v35, %v2240_v55 }
 0x2ca   :  { %1055 = vmatpush.msrb.mxu2 %v868_v60 }
 0x2cb   :  { %1020 = vmatpush.msra.mxu1 %v903_v42  ;;  %v891_v42 = vadd.f32 %v890_v58, %v2240_v55  ;;  %v926_v55 = vadd.f32 %v925_v22, %v2243_v34 }
 0x2cc   :  { %1056 = vmatpush.msrb.mxu2 %v865_v40  ;;  %v935_v40 = vadd.f32 %v934_v49, %v2243_v34 }
 0x2cd   :  { %1021 = vmatpush.msra.mxu1 %v900_v52  ;;  %v2787_v45 = vpop.f32.mrf.mxu3  ;;  %v853_v52 = vadd.f32 %v852_v32, %v2232_v59  ;;  %v1514_v59 = vld [vmem:[%s2979_s1 + $0x30] sm:$0xff]  ;;  %v923_v32 = vadd.f32 %v922_v16, %v2243_v34 }
 0x2ce   :  { %v937_v24 = vpop.f32.mrf.mxu2  ;;  %1057 = vmatpush.msrb.mxu2 %v862_v43  ;;  %v932_v43 = vadd.f32 %v931_v0, %v2243_v34  ;;  %v818_v0 = vadd.f32 %v2771_v17, %v2623_v50 }
 0x2cf   :  { %v938_v31 = vadd.f32 %v937_v24, %v2243_v34  ;;  %1022 = vmatpush.msra.mxu1 %v897_v46  ;;  %v929_v46 = vadd.f32 %v928_v11, %v2243_v34  ;;  %v1517_v34 = vld [vmem:[%s2979_s1 + $0x38] sm:$0xff] }
 0x2d0   :  { %1058 = vmatpush.msrb.mxu2 %v859_v23 }
 0x2d1   :  { %1023 = vmatpush.msra.mxu1 %v894_v14  ;;  %1090 = vmatpush.msrb.mxu3 %v938_v31 }
 0x2d2   :  { %1059 = vmatpush.msrb.mxu2 %v856_v48 }
 0x2d3   :  { %1024 = vmatpush.msra.mxu1 %v891_v42  ;;  %1091 = vmatpush.msrb.mxu3 %v935_v40  ;;  %v821_v42 = vadd.f32 %v2773_v8, %v2623_v50 }
 0x2d4   :  { %1060 = vmatpush.msrb.mxu2 %v853_v52 }
 0x2d5   :  { %1025 = vmatpush.msra.mxu1 %v888_v61  ;;  %1092 = vmatpush.msrb.mxu3 %v932_v43  ;;  %v957_v23 = vpop.f32.mrf.mxu3 }
 0x2d6   :  { %1401 = vmatmul.msk.f32.vlgmr.msrb.gmra.mxu2 %vm384_vm0, %v1513_v30  ;;  %1395 = vmatmul.msk.f32.vlgmr.msra.gmra.mxu1 %vm384_vm0, %v1514_v59  ;;  %v824_v59 = vadd.f32 %v2775_v25, %v2623_v50 }
 0x2d7   :  { %1093 = vmatpush.msrb.mxu3 %v929_v46  ;;  %1168 = vmatpush.msrb.mxu1 %v2465_v19  ;;  %v1516_v19 = vld [vmem:[%s2979_s1 + $0x8] sm:$0xff] }
 0x2d9   :  { %1094 = vmatpush.msrb.mxu3 %v926_v55  ;;  %1169 = vmatpush.msrb.mxu1 %v2470_v15  ;;  %v1518_v15 = vld [vmem:[%s2979_s1 + $0x68] sm:$0xff] }
 0x2db   :  { %1095 = vmatpush.msrb.mxu3 %v923_v32  ;;  %1170 = vmatpush.msrb.mxu1 %v2484_v27 }
 0x2dc   :  { %1407 = vmatmul.msk.f32.vlgmr.msrb.gmra.mxu3 %vm384_vm0, %v1515_v10 }
 0x2dd   :  { %v960_v58 = vpop.f32.mrf.mxu3  ;;  %1171 = vmatpush.msrb.mxu1 %v2500_v20  ;;  %v1519_v20 = vld [vmem:[%s2979_s1 + $0x10] sm:$0xff] }
 0x2de   :  { %1402 = vmatmul.msk.f32.gmra.mxu2 %vm384_vm0, %v1516_v19  ;;  %1396 = vmatmul.msk.f32.gmra.mxu1 %vm384_vm0, %v1517_v34 }
 0x2df   :  { %1172 = vmatpush.msrb.mxu1 %v2505_v9 }
 0x2e1   :  { %1173 = vmatpush.msrb.mxu1 %v2518_v21  ;;  %v3190_v21 = vld [vmem:[#allocation27_spill] sm:$0xff] }
 0x2e3   :  { %1174 = vmatpush.msrb.mxu1 %v2526_v7  ;;  %v2887_v7 = vpop.f32.mrf.mxu0 }
 0x2e4   :  { %1408 = vmatmul.msk.f32.gmra.mxu3 %vm384_vm0, %v1518_v15 }
 0x2e5   :  { %v963_v27 = vpop.f32.mrf.mxu3  ;;  %1175 = vmatpush.msrb.mxu1 %v2539_v53 }
 0x2e6   :  { %1403 = vmatmul.msk.f32.gmra.mxu2 %vm384_vm0, %v1519_v20  ;;  %1397 = vmatmul.msk.f32.gmra.mxu1 %vm384_vm0, %v2315_v28 }
 0x2e7   :  { %1176 = vmatpush.msrb.mxu1 %v2544_v56 }
 0x2e9   :  { %1177 = vmatpush.msrb.mxu1 %v2552_v5 }
 0x2eb   :  { %1178 = vmatpush.msrb.mxu1 %v2560_v39  ;;  %v2889_v53 = vpop.f32.mrf.mxu0 }
 0x2ec   :  { %1409 = vmatmul.msk.f32.gmra.mxu3 %vm384_vm0, %v2320_v12 }
 0x2ed   :  { %v966_v9 = vpop.f32.mrf.mxu3  ;;  %1179 = vmatpush.msrb.mxu1 %v2569_v26 }
 0x2ee   :  { %1404 = vmatmul.msk.f32.gmra.mxu2 %vm384_vm0, %v2329_v36  ;;  %1398 = vmatmul.msk.f32.gmra.mxu1 %vm384_vm0, %v2349_v29 }
 0x2ef   :  { %1180 = vmatpush.msrb.mxu1 %v2575_v2 }
 0x2f1   :  { %1181 = vmatpush.msrb.mxu1 %v2583_v47 }
 0x2f3   :  { %1182 = vmatpush.msrb.mxu1 %v2591_v57  ;;  %v2891_v56 = vpop.f32.mrf.mxu0 }
 0x2f4   :  { %1410 = vmatmul.msk.f32.gmra.mxu3 %vm384_vm0, %v2355_v44  ;;  %v967_v44 = vadd.f32 %v966_v9, %v2303_v3 }
 0x2f5   :  { %v969_v28 = vpop.f32.mrf.mxu3  ;;  %1183 = vmatpush.msrb.mxu1 %v2599_v62 }
 0x2f6   :  { %1405 = vmatmul.msk.f32.gmra.mxu2 %vm384_vm0, %v2361_v33  ;;  %1399 = vmatmul.msk.f32.gmra.mxu1 %vm384_vm0, %v2384_v1  ;;  %v970_v29 = vadd.f32 %v969_v28, %v2303_v3  ;;  %v964_v33 = vadd.f32 %v963_v27, %v2303_v3  ;;  %v961_v1 = vadd.f32 %v960_v58, %v2303_v3 }
 0x2f7   :  { %v827_v27 = vadd.f32 %v2777_v54, %v2623_v50 }
 0x2fb   :  { %v2893_v5 = vpop.f32.mrf.mxu0 }
 0x2fc   :  { %1411 = vmatmul.msk.f32.gmra.mxu3 %vm384_vm0, %v2391_v4  ;;  %v958_v4 = vadd.f32 %v957_v23, %v2303_v3 }
 0x2fd   :  { %v972_v12 = vpop.f32.mrf.mxu3 }
 0x2fe   :  { %v973_v36 = vadd.f32 %v972_v12, %v2303_v3  ;;  %1406 = vmatmul.msk.f32.gmra.mxu2 %vm384_vm0, %v2397_v41  ;;  %1400 = vmatmul.msk.f32.gmra.mxu1 %vm384_vm0, %v2423_v13  ;;  %v1520_v41 = vld [vmem:[%s2979_s1 + $0x90] sm:$0xff]  ;;  %v3188_v13 = vld [vmem:[#allocation30_spill] sm:$0xff] }
 0x2ff   :  { %v3191_v3 = vld [vmem:[#allocation6_spill] sm:$0xff] }
 0x300   :  { %1131 = vmatpush.msrb.mxu0 %v973_v36 }
 0x302   :  { %1132 = vmatpush.msrb.mxu0 %v970_v29 }
 0x303   :  { %v2895_v26 = vpop.f32.mrf.mxu0 }
 0x304   :  { %1133 = vmatpush.msrb.mxu0 %v967_v44  ;;  %1412 = vmatmul.msk.f32.gmra.mxu3 %vm384_vm0, %v2430_v18  ;;  %v3189_v18 = vld [vmem:[#allocation24_spill] sm:$0xff]  ;;  %v830_v44 = vadd.f32 %v2779_v63, %v2623_v50  ;;  %v993_v63 = vadd.f32 %v2887_v7, %v2660_v6 }
 0x306   :  { %1134 = vmatpush.msrb.mxu0 %v964_v33 }
 0x308   :  { %1135 = vmatpush.msrb.mxu0 %v961_v1 }
 0x30a   :  { %1136 = vmatpush.msrb.mxu0 %v958_v4 }
 0x30b   :  { %1413 = vmatmul.msk.f32.vlgmr.msrb.gmra.mxu0 %vm384_vm0, %v1520_v41  ;;  %v2897_v62 = vpop.f32.mrf.mxu0 }
 0x313   :  { %1414 = vmatmul.msk.f32.gmra.mxu0 %vm384_vm0, %v2379_v37 }
 0x31b   :  { %1415 = vmatmul.msk.f32.gmra.mxu0 %vm384_vm0, %v3188_v13 }
 0x323   :  { %1416 = vmatmul.msk.f32.gmra.mxu0 %vm384_vm0, %v3189_v18  ;;  %v833_v18 = vadd.f32 %v2787_v45, %v2623_v50 }
 0x32b   :  { %1417 = vmatmul.msk.f32.gmra.mxu0 %vm384_vm0, %v3190_v21 }
 0x333   :  { %1418 = vmatmul.msk.f32.gmra.mxu0 %vm384_vm0, %v3191_v3 }
 0x353   :  { %v1027_v37 = vpop.f32.mrf.mxu1 }
 0x359   :  { %v1062_v39 = vpop.f32.mrf.mxu2 }
 0x35a   :  { %v1063_v16 = vadd.f32 %v1062_v39, %v1027_v37 }
 0x35b   :  { %v1030_v47 = vpop.f32.mrf.mxu1 }
 0x35f   :  { %v1097_v2 = vpop.f32.mrf.mxu3 }
 0x360   :  { %v1115_v35 = vadd.f32 %v1097_v2, %v1063_v16  ;;  %v3192_v2 = vld [vmem:[#allocation44_spill] sm:$0xff]  ;;  %v996_v16 = vadd.f32 %v2889_v53, %v2660_v6 }
 0x361   :  { %v1065_v57 = vpop.f32.mrf.mxu2 }
 0x362   :  { %v1066_v60 = vadd.f32 %v1065_v57, %v1030_v47 }
 0x363   :  { %v1033_v11 = vpop.f32.mrf.mxu1 }
 0x367   :  { %v1100_v22 = vpop.f32.mrf.mxu3 }
 0x368   :  { %v1116_v31 = vadd.f32 %v1100_v22, %v1066_v60 }
 0x369   :  { %v1068_v51 = vpop.f32.mrf.mxu2 }
 0x36a   :  { %v1069_v52 = vadd.f32 %v1068_v51, %v1033_v11  ;;  %v999_v51 = vadd.f32 %v2891_v56, %v2660_v6 }
 0x36b   :  { %v1036_v61 = vpop.f32.mrf.mxu1 }
 0x36f   :  { %v1103_v14 = vpop.f32.mrf.mxu3 }
 0x370   :  { %v1117_v17 = vadd.f32 %v1103_v14, %v1069_v52 }
 0x371   :  { %v1071_v43 = vpop.f32.mrf.mxu2 }
 0x372   :  { %v1072_v32 = vadd.f32 %v1071_v43, %v1036_v61 }
 0x373   :  { %v1039_v58 = vpop.f32.mrf.mxu1 }
 0x377   :  { %v1106_v23 = vpop.f32.mrf.mxu3 }
 0x378   :  { %v1118_v19 = vadd.f32 %v1106_v23, %v1072_v32 }
 0x379   :  { %v1074_v8 = vpop.f32.mrf.mxu2 }
 0x37a   :  { %v1075_v9 = vadd.f32 %v1074_v8, %v1039_v58 }
 0x37b   :  { %v1042_v12 = vpop.f32.mrf.mxu1 }
 0x37f   :  { %v1109_v15 = vpop.f32.mrf.mxu3 }
 0x380   :  { %v1119_v25 = vadd.f32 %v1109_v15, %v1075_v9  ;;  %v1005_v15 = vadd.f32 %v2895_v26, %v2660_v6 }
 0x381   :  { %v1077_v36 = vpop.f32.mrf.mxu2 }
 0x382   :  { %v1078_v1 = vadd.f32 %v1077_v36, %v1042_v12 }
 0x387   :  { %v1112_v4 = vpop.f32.mrf.mxu3 }
 0x388   :  { %v1138_v38 = vpop.f32.mrf.mxu0  ;;  %v1120_v54 = vadd.f32 %v1112_v4, %v1078_v1 }
 0x389   :  { %v1156_v49 = vadd.f32 %v1138_v38, %v1115_v35 }
 0x38b   :  { %v2901_v24 = vadd.f32 %v1156_v49, %v818_v0 }
 0x38d   :  { %1184 = vmatmul.f32.vlgmr.msrb.gmra.mxu1 %v2901_v24  ;;  %v1323_v58 = vmax.f32 %v2901_v24, 0.0 }
 0x390   :  { %v1141_v48 = vpop.f32.mrf.mxu0 }
 0x391   :  { %v1157_v40 = vadd.f32 %v1141_v48, %v1116_v31  ;;  %v1002_v48 = vadd.f32 %v2893_v5, %v2660_v6 }
 0x393   :  { %v2906_v46 = vadd.f32 %v1157_v40, %v821_v42 }
 0x395   :  { %1187 = vmatmul.f32.gmra.mxu1 %v2906_v46 }
 0x398   :  { %v1144_v30 = vpop.f32.mrf.mxu0 }
 0x399   :  { %v1158_v55 = vadd.f32 %v1144_v30, %v1117_v17 }
 0x39b   :  { %v2911_v10 = vadd.f32 %v1158_v55, %v824_v59 }
 0x39d   :  { %1190 = vmatmul.f32.gmra.mxu1 %v2911_v10 }
 0x3a0   :  { %v1147_v34 = vpop.f32.mrf.mxu0 }
 0x3a1   :  { %v1159_v20 = vadd.f32 %v1147_v34, %v1118_v19 }
 0x3a3   :  { %v2916_v28 = vadd.f32 %v1159_v20, %v827_v27 }
 0x3a5   :  { %1193 = vmatmul.f32.gmra.mxu1 %v2916_v28 }
 0x3a8   :  { %v1150_v29 = vpop.f32.mrf.mxu0 }
 0x3a9   :  { %v1160_v33 = vadd.f32 %v1150_v29, %v1119_v25 }
 0x3ab   :  { %v2921_v41 = vadd.f32 %v1160_v33, %v830_v44  ;;  %v3193_v44 = vld [vmem:[#allocation28_spill] sm:$0xff] }
 0x3ad   :  { %1196 = vmatmul.f32.gmra.mxu1 %v2921_v41 }
 0x3b0   :  { %v1153_v13 = vpop.f32.mrf.mxu0 }
 0x3b1   :  { %v1161_v21 = vadd.f32 %v1153_v13, %v1120_v54 }
 0x3b3   :  { %v2926_v3 = vadd.f32 %v1161_v21, %v833_v18 }
 0x3b5   :  { %1199 = vmatmul.f32.gmra.mxu1 %v2926_v3 }
 0x40a   :  { %v1185_v37 = vpop.f32.mrf.mxu1 }
 0x40b   :  { %v1186_v39 = vadd.f32 %v1185_v37, %v993_v63 }
 0x40d   :  { %v1203_v47 = vadd.f32 %v1186_v39, %v3192_v2  ;;  %v1324_v39 = vmax.f32 %v2906_v46, 0.0  ;;  %v3194_v46 = vld [vmem:[#allocation8_spill] sm:$0xff] }
 0x40f   :  { %v1419_v57 = vmul.f32 -1.442695, %v1203_v47 }
 0x411   :  { %1481 = vpow2.f32 %v1419_v57 }
 0x412   :  { %v1188_v22 = vpop.f32.mrf.mxu1 }
 0x413   :  { %v1189_v35 = vadd.f32 %v1188_v22, %v996_v16  ;;  %v1008_v16 = vadd.f32 %v2897_v62, %v2660_v6 }
 0x415   :  { %v1204_v50 = vadd.f32 %v1189_v35, %v3192_v2 }
 0x417   :  { %v1482_v45 = vpop.eup %1481  ;;  %v1420_v11 = vmul.f32 -1.442695, %v1204_v50 }
 0x418   :  { %v1227_v38 = vadd.f32 1.0, %v1482_v45 }
 0x419   :  { %1483 = vpow2.f32 %v1420_v11 }
 0x41a   :  { %1485 = vrcp.f32 %v1227_v38  ;;  %v1191_v7 = vpop.f32.mrf.mxu1  ;;  %v1244_v56 = vand.u32 2147483648, %v1227_v38  ;;  %v1242_v17 = vand.u32 2147483647, %v1227_v38  ;;  %vm1238_vm10 = vweird.f32 %v1227_v38 }
 0x41b   :  { %v1192_v0 = vadd.f32 %v1191_v7, %v999_v51 }
 0x41c   :  { %v1245_v5 = vor.u32 1.1754944e-38, %v1244_v56  ;;  %vm1243_vm12 = vcmp.eq.f32.partialorder %v1242_v17, 8.507059e+37 }
 0x41d   :  { %v1205_v49 = vadd.f32 %v1192_v0, %v3192_v2 }
 0x41f   :  { %v1484_v60 = vpop.eup %1483  ;;  %v1421_v14 = vmul.f32 -1.442695, %v1205_v49 }
 0x420   :  { %v1486_v53 = vpop.eup %1485  ;;  %v1228_v31 = vadd.f32 1.0, %v1484_v60 }
 0x421   :  { %v1234_v42 = vmul.f32 %v1486_v53, %v1227_v38  ;;  %1487 = vpow2.f32 %v1421_v14  ;;  %vm1239_vm0 = vweird.f32 %v1486_v53 }
 0x422   :  { %1489 = vrcp.f32 %v1228_v31  ;;  %v1194_v40 = vpop.f32.mrf.mxu1  ;;  %vm1240_vm11 = vmor %vm1238_vm10, %vm1239_vm0  ;;  %v1259_v36 = vand.u32 2147483648, %v1228_v31  ;;  %v1257_v1 = vand.u32 2147483647, %v1228_v31  ;;  %vm1253_vm14 = vweird.f32 %v1228_v31 }
 0x423   :  { %v1235_v52 = vsub.f32 1.0, %v1234_v42  ;;  %v1195_v61 = vadd.f32 %v1194_v40, %v1002_v48  ;;  %v1325_v48 = vmax.f32 %v2911_v10, 0.0 }
 0x424   :  { %v1260_v21 = vor.u32 1.1754944e-38, %v1259_v36  ;;  %vm1258_vm1 = vcmp.eq.f32.partialorder %v1257_v1, 8.507059e+37  ;;  %v3196_v36 = vld [vmem:[#allocation10_spill] sm:$0xff] }
 0x425   :  { %v1236_v43 = vmul.f32 %v1486_v53, %v1235_v52  ;;  %v1206_v23 = vadd.f32 %v1195_v61, %v3192_v2 }
 0x427   :  { %v1488_v30 = vpop.eup %1487  ;;  %v1237_v59 = vadd.f32 %v1486_v53, %v1236_v43  ;;  %v1422_v55 = vmul.f32 -1.442695, %v1206_v23 }
 0x428   :  { %v1490_v32 = vpop.eup %1489  ;;  %v1229_v8 = vadd.f32 1.0, %v1488_v30 }
 0x429   :  { %v1241_v19 = vsel %vm1240_vm11, %v1486_v53, %v1237_v59  ;;  %v1249_v34 = vmul.f32 %v1490_v32, %v1228_v31  ;;  %1491 = vpow2.f32 %v1422_v55  ;;  %vm1254_vm13 = vweird.f32 %v1490_v32  ;;  %v3195_v59 = vld [vmem:[#allocation45_spill] sm:$0xff] }
 0x42a   :  { %v1246_v27 = vsel %vm1243_vm12, %v1245_v5, %v1241_v19  ;;  %1493 = vrcp.f32 %v1229_v8  ;;  %v1197_v20 = vpop.f32.mrf.mxu1  ;;  %vm1255_vm15 = vmor %vm1253_vm14, %vm1254_vm13  ;;  %v1274_v38 = vand.u32 2147483648, %v1229_v8  ;;  %v1272_v49 = vand.u32 2147483647, %v1229_v8 }
 0x42b   :  { %v1329_v9 = vmul.f32 %v1323_v58, %v1246_v27  ;;  %v1335_v25 = vsub.f32 1.0, %v1246_v27  ;;  %v1250_v12 = vsub.f32 1.0, %v1249_v34  ;;  %v1198_v29 = vadd.f32 %v1197_v20, %v1005_v15 }
 0x42c   :  { %vm1268_vm3 = vweird.f32 %v1229_v8  ;;  %v1275_v62 = vor.u32 1.1754944e-38, %v1274_v38  ;;  %vm1273_vm5 = vcmp.eq.f32.partialorder %v1272_v49, 8.507059e+37  ;;  %v1326_v19 = vmax.f32 %v2916_v28, 0.0  ;;  %v3198_v49 = vld [vmem:[#allocation46_spill] sm:$0xff] }
 0x42d   :  { %v1341_v24 = vmul.f32 %v1335_v25, %v3193_v44  ;;  %v1251_v33 = vmul.f32 %v1490_v32, %v1250_v12  ;;  %v1207_v4 = vadd.f32 %v1198_v29, %v3192_v2 }
 0x42f   :  { %v1492_v54 = vpop.eup %1491  ;;  %v1347_v13 = vadd.f32 %v1341_v24, %v1329_v9  ;;  %v1252_v18 = vadd.f32 %v1490_v32, %v1251_v33  ;;  %v1423_v37 = vmul.f32 -1.442695, %v1207_v4 }
 0x430   :  { %v1494_v26 = vpop.eup %1493  ;;  %v1230_v63 = vadd.f32 1.0, %v1492_v54 }
 0x431   :  { %1353 = vst [vmem:[%s2980_s3] sm:$0xff] %v1347_v13  ;;  %v1256_v47 = vsel %vm1255_vm15, %v1490_v32, %v1252_v18  ;;  %v1264_v57 = vmul.f32 %v1494_v26, %v1229_v8  ;;  %vm1269_vm2 = vweird.f32 %v1494_v26 }
 0x432   :  { %v1261_v22 = vsel %vm1258_vm1, %v1260_v21, %v1256_v47  ;;  %1495 = vrcp.f32 %v1230_v63  ;;  %v1200_v35 = vpop.f32.mrf.mxu1  ;;  %vm1270_vm4 = vmor %vm1268_vm3, %vm1269_vm2  ;;  %v1287_v23 = vand.u32 2147483647, %v1230_v63  ;;  %v1289_v30 = vand.u32 2147483648, %v1230_v63 }
 0x433   :  { %v1330_v50 = vmul.f32 %v1324_v39, %v1261_v22  ;;  %v1336_v45 = vsub.f32 1.0, %v1261_v22  ;;  %v1265_v11 = vsub.f32 1.0, %v1264_v57  ;;  %1497 = vpow2.f32 %v1423_v37 }
 0x434   :  { %v1201_v51 = vadd.f32 %v1200_v35, %v1008_v16  ;;  %vm1283_vm7 = vweird.f32 %v1230_v63  ;;  %v1290_v8 = vor.u32 1.1754944e-38, %v1289_v30  ;;  %vm1288_vm9 = vcmp.eq.f32.partialorder %v1287_v23, 8.507059e+37  ;;  %v3197_v35 = vld [vmem:[#allocation29_spill] sm:$0xff] }
 0x435   :  { %v1342_v7 = vmul.f32 %v1336_v45, %v3194_v46  ;;  %v1266_v0 = vmul.f32 %v1494_v26, %v1265_v11  ;;  %v1328_v46 = vmax.f32 %v2926_v3, 0.0 }
 0x436   :  { %v1208_v60 = vadd.f32 %v1201_v51, %v3192_v2 }
 0x437   :  { %v1348_v14 = vadd.f32 %v1342_v7, %v1330_v50  ;;  %v1267_v53 = vadd.f32 %v1494_v26, %v1266_v0 }
 0x438   :  { %v1496_v6 = vpop.eup %1495  ;;  %v1424_v31 = vmul.f32 -1.442695, %v1208_v60 }
 0x439   :  { %1354 = vst [vmem:[%s2980_s3 + $0x8] sm:$0xff] %v1348_v14  ;;  %v1271_v42 = vsel %vm1270_vm4, %v1494_v26, %v1267_v53  ;;  %v1279_v40 = vmul.f32 %v1496_v6, %v1230_v63  ;;  %v1498_v52 = vpop.eup %1497  ;;  %vm1284_vm6 = vweird.f32 %v1496_v6  ;;  %v1327_v26 = vmax.f32 %v2921_v41, 0.0 }
 0x43a   :  { %v1276_v61 = vsel %vm1273_vm5, %v1275_v62, %v1271_v42  ;;  %1499 = vpow2.f32 %v1424_v31  ;;  %v1231_v17 = vadd.f32 1.0, %v1498_v52  ;;  %vm1285_vm8 = vmor %vm1283_vm7, %vm1284_vm6 }
 0x43b   :  { %v1331_v2 = vmul.f32 %v1325_v48, %v1276_v61  ;;  %v1337_v56 = vsub.f32 1.0, %v1276_v61  ;;  %v1280_v43 = vsub.f32 1.0, %v1279_v40 }
 0x43c   :  { %1501 = vrcp.f32 %v1231_v17  ;;  %v1304_v33 = vand.u32 2147483648, %v1231_v17  ;;  %v1302_v28 = vand.u32 2147483647, %v1231_v17  ;;  %vm1298_vm10 = vweird.f32 %v1231_v17 }
 0x43d   :  { %v1343_v55 = vmul.f32 %v1337_v56, %v3195_v59  ;;  %v1281_v32 = vmul.f32 %v1496_v6, %v1280_v43 }
 0x43e   :  { %v1305_v18 = vor.u32 1.1754944e-38, %v1304_v33  ;;  %vm1303_vm12 = vcmp.eq.f32.partialorder %v1302_v28, 8.507059e+37 }
 0x43f   :  { %v1349_v10 = vadd.f32 %v1343_v55, %v1331_v2  ;;  %v1282_v58 = vadd.f32 %v1496_v6, %v1281_v32 }
 0x440   :  { %v1500_v5 = vpop.eup %1499 }
 0x441   :  { %1355 = vst [vmem:[%s2980_s3 + $0x10] sm:$0xff] %v1349_v10  ;;  %v1286_v34 = vsel %vm1285_vm8, %v1496_v6, %v1282_v58  ;;  %v1232_v15 = vadd.f32 1.0, %v1500_v5 }
 0x442   :  { %v1291_v27 = vsel %vm1288_vm9, %v1290_v8, %v1286_v34  ;;  %v1502_v20 = vpop.eup %1501 }
 0x443   :  { %v1332_v9 = vmul.f32 %v1326_v19, %v1291_v27  ;;  %v1338_v25 = vsub.f32 1.0, %v1291_v27  ;;  %1503 = vrcp.f32 %v1232_v15  ;;  %v1294_v12 = vmul.f32 %v1502_v20, %v1231_v17 }
 0x444   :  { %vm1299_vm0 = vweird.f32 %v1502_v20  ;;  %v1317_v39 = vand.u32 2147483647, %v1232_v15  ;;  %v1319_v47 = vand.u32 2147483648, %v1232_v15  ;;  %vm1313_vm14 = vweird.f32 %v1232_v15 }
 0x445   :  { %v1344_v29 = vmul.f32 %v1338_v25, %v3196_v36  ;;  %v1295_v44 = vsub.f32 1.0, %v1294_v12  ;;  %vm1300_vm11 = vmor %vm1298_vm10, %vm1299_vm0 }
 0x446   :  { %v1320_v11 = vor.u32 1.1754944e-38, %v1319_v47  ;;  %vm1318_vm1 = vcmp.eq.f32.partialorder %v1317_v39, 8.507059e+37 }
 0x447   :  { %v1350_v24 = vadd.f32 %v1344_v29, %v1332_v9  ;;  %v1296_v1 = vmul.f32 %v1502_v20, %v1295_v44 }
 0x449   :  { %v1504_v4 = vpop.eup %1503  ;;  %1356 = vst [vmem:[%s2980_s3 + $0x18] sm:$0xff] %v1350_v24  ;;  %v1297_v54 = vadd.f32 %v1502_v20, %v1296_v1 }
 0x44a   :  { %v1309_v13 = vmul.f32 %v1504_v4, %v1232_v15  ;;  %vm1314_vm13 = vweird.f32 %v1504_v4 }
 0x44b   :  { %v1301_v21 = vsel %vm1300_vm11, %v1502_v20, %v1297_v54  ;;  %vm1315_vm15 = vmor %vm1313_vm14, %vm1314_vm13 }
 0x44c   :  { %v1310_v63 = vsub.f32 1.0, %v1309_v13  ;;  %v1306_v37 = vsel %vm1303_vm12, %v1305_v18, %v1301_v21 }
 0x44d   :  { %v1333_v57 = vmul.f32 %v1327_v26, %v1306_v37  ;;  %v1339_v16 = vsub.f32 1.0, %v1306_v37 }
 0x44e   :  { %v1311_v22 = vmul.f32 %v1504_v4, %v1310_v63 }
 0x44f   :  { %v1345_v50 = vmul.f32 %v1339_v16, %v3197_v35 }
 0x450   :  { %v1312_v45 = vadd.f32 %v1504_v4, %v1311_v22 }
 0x451   :  { %v1351_v38 = vadd.f32 %v1345_v50, %v1333_v57 }
 0x452   :  { %v1316_v51 = vsel %vm1315_vm15, %v1504_v4, %v1312_v45 }
 0x453   :  { %v1321_v41 = vsel %vm1318_vm1, %v1320_v11, %v1316_v51  ;;  %1357 = vst [vmem:[%s2980_s3 + $0x20] sm:$0xff] %v1351_v38 }
 0x454   :  { %v1340_v7 = vsub.f32 1.0, %v1321_v41  ;;  %v1334_v0 = vmul.f32 %v1328_v46, %v1321_v41 }
 0x456   :  { %v1346_v60 = vmul.f32 %v1340_v7, %v3198_v49 }
 0x458   :  { %v1352_v14 = vadd.f32 %v1346_v60, %v1334_v0 }
 0x45a   :  { %1358 = vst [vmem:[%s2980_s3 + $0x28] sm:$0xff] %v1352_v14 }

</bundles_post_ra>
